<compile_context>
chip_gen: v7x
topology: tpu7x:2x2x1
jax: 0.10.0
libtpu: 0.0.40
codegen_flags: <defaults>
</compile_context>

<pallas_src>
import functools
import math

import jax
import jax.numpy as jnp
from jax import lax
from jax.experimental import pallas as pl
from jax.experimental.pallas import tpu as pltpu


# ---------------------------------------------------------------------------
# Fused encoder-layer kernel
# ---------------------------------------------------------------------------

def _layernorm_f32(x, gamma, beta, eps):
    mu = jnp.mean(x, axis=-1, keepdims=True)
    var = jnp.mean(jnp.square(x - mu), axis=-1, keepdims=True)
    return (x - mu) * lax.rsqrt(var + eps) * gamma + beta


def _encoder_layer_kernel(x_ref, wqkv_ref, bqkv_ref, wo_ref, bo_ref,
                          g1_ref, bt1_ref, w1_ref, b1_ref, w2_ref, b2_ref,
                          g2_ref, bt2_ref, o_ref, *, n_head, d_head, scale, eps):
    d_model = n_head * d_head
    f32, bf16 = jnp.float32, jnp.bfloat16

    x = x_ref[0].astype(f32)                                        # (S, D)

    # ---- QKV projection (bf16 MXU feed, f32 accumulation) ----
    qkv = jnp.dot(x.astype(bf16), wqkv_ref[...],
                  preferred_element_type=f32) + bqkv_ref[...]        # (S, 3D)
    q = qkv[:, :d_model]
    k = qkv[:, d_model:2 * d_model]
    v = qkv[:, 2 * d_model:]

    # ---- per-head attention; out-projection folded into the head loop ----
    wo = wo_ref[...]                                                 # (D, D) bf16
    y = jnp.zeros_like(x)                                            # (S, D) f32
    for h in range(n_head):                                          # static unroll
        lo = h * d_head
        hi = lo + d_head
        qh = q[:, lo:hi].astype(bf16)
        kh = k[:, lo:hi].astype(bf16)
        vh = v[:, lo:hi].astype(bf16)
        # scores = qh @ kh^T  (contract last dims -> no explicit transpose)
        s = lax.dot_general(qh, kh, (((1,), (1,)), ((), ())),
                            preferred_element_type=f32) * scale      # (S, S)
        s = s - jnp.max(s, axis=-1, keepdims=True)
        p = jnp.exp(s)
        p = p * pl.reciprocal(jnp.sum(p, axis=-1, keepdims=True), approx=True)
        oh = jnp.dot(p.astype(bf16), vh, preferred_element_type=f32)  # (S, Dh)
        # attn @ Wo == sum_h head_h @ Wo[h*Dh:(h+1)*Dh, :]
        y = y + jnp.dot(oh.astype(bf16), wo[lo:hi, :],
                        preferred_element_type=f32)
    y = y + bo_ref[...]

    # ---- residual + LayerNorm1 (post-norm) ----
    z = _layernorm_f32(x + y, g1_ref[...], bt1_ref[...], eps)

    # ---- feed-forward + residual + LayerNorm2 ----
    h1 = jnp.dot(z.astype(bf16), w1_ref[...],
                 preferred_element_type=f32) + b1_ref[...]
    h1 = jnp.maximum(h1, 0.0)
    h2 = jnp.dot(h1.astype(bf16), w2_ref[...],
                 preferred_element_type=f32) + b2_ref[...]
    out = _layernorm_f32(z + h2, g2_ref[...], bt2_ref[...], eps)

    o_ref[0] = out.astype(o_ref.dtype)


def encoder_layer_fused(x, p, n_head):
    """One fused pallas_call per encoder layer.  x: (B, S, D) float32."""
    B, S, D = x.shape
    assert D % n_head == 0
    d_head = D // n_head
    F = p["w1"].shape[1]

    xmap = lambda b: (b, 0, 0)
    wmap = lambda b: (0, 0)       # constant block index -> weight DMA'd once, stays resident

    kernel = functools.partial(
        _encoder_layer_kernel,
        n_head=n_head, d_head=d_head,
        scale=1.0 / math.sqrt(d_head), eps=1e-5)

    return pl.pallas_call(
        kernel,
        grid=(B,),
        in_specs=[
            pl.BlockSpec((1, S, D), xmap),      # x
            pl.BlockSpec((D, 3 * D), wmap),     # Wqkv  (Din, Dout) bf16
            pl.BlockSpec((1, 3 * D), wmap),     # b_qkv f32
            pl.BlockSpec((D, D), wmap),         # Wo
            pl.BlockSpec((1, D), wmap),         # b_o
            pl.BlockSpec((1, D), wmap),         # ln1 gamma
            pl.BlockSpec((1, D), wmap),         # ln1 beta
            pl.BlockSpec((D, F), wmap),         # W1
            pl.BlockSpec((1, F), wmap),         # b1
            pl.BlockSpec((F, D), wmap),         # W2
            pl.BlockSpec((1, D), wmap),         # b2
            pl.BlockSpec((1, D), wmap),         # ln2 gamma
            pl.BlockSpec((1, D), wmap),         # ln2 beta
        ],
        out_specs=pl.BlockSpec((1, S, D), xmap),
        out_shape=jax.ShapeDtypeStruct((B, S, D), x.dtype),
        compiler_params=pltpu.CompilerParams(
            dimension_semantics=("parallel",),
        ),
    )(x, p["wqkv"], p["bqkv"], p["wo"], p["bo"], p["ln1_g"], p["ln1_b"],
      p["w1"], p["b1"], p["w2"], p["b2"], p["ln2_g"], p["ln2_b"])


# ---------------------------------------------------------------------------
# Encoder stacks (eval mode: dropout = identity)
# ---------------------------------------------------------------------------

def transformer_encoder(x_sbd, layer_params, n_head):
    # (S, B, D) -> (B, S, D) once, run all fused layers, transpose back once.
    x = jnp.swapaxes(x_sbd, 0, 1)
    for p in layer_params:
        x = encoder_layer_fused(x, p, n_head)
    return jnp.swapaxes(x, 0, 1)


@functools.partial(jax.jit, static_argnames=("n_head_part", "n_head_seq"))
def transformer_encoder_part_seq(in_part, in_seq, part_layers, seq_layers,
                                 n_head_part, n_head_seq):
    # The two streams are data-independent; jitting them together lets XLA
    # schedule / overlap them.
    out_part = transformer_encoder(in_part, part_layers, n_head_part)
    out_seq = transformer_encoder(in_seq, seq_layers, n_head_seq)
    return out_part, out_seq


# ---------------------------------------------------------------------------
# Parameter construction (PyTorch layout) and kernel-layout preparation
# ---------------------------------------------------------------------------

def init_layer_params(key, d_model, dim_ff):
    k0, k1, k2, k3 = jax.random.split(key, 4)
    s = 0.05
    return {
        "in_proj_w":  s * jax.random.normal(k0, (3 * d_model, d_model), jnp.float32),
        "in_proj_b":  jnp.zeros((3 * d_model,), jnp.float32),
        "out_proj_w": s * jax.random.normal(k1, (d_model, d_model), jnp.float32),
        "out_proj_b": jnp.zeros((d_model,), jnp.float32),
        "lin1_w":     s * jax.random.normal(k2, (dim_ff, d_model), jnp.float32),
        "lin1_b":     jnp.zeros((dim_ff,), jnp.float32),
        "lin2_w":     s * jax.random.normal(k3, (d_model, dim_ff), jnp.float32),
        "lin2_b":     jnp.zeros((d_model,), jnp.float32),
        "ln1_g":      jnp.ones((d_model,), jnp.float32),
        "ln1_b":      jnp.zeros((d_model,), jnp.float32),
        "ln2_g":      jnp.ones((d_model,), jnp.float32),
        "ln2_b":      jnp.zeros((d_model,), jnp.float32),
    }


def prep_layer_params(p):
    """Kernel layout: matmul weights transposed to (Din, Dout) and cast to bf16
    (clean MXU feed, lane-dense output); biases / LN params as (1, D) f32 rows."""
    return {
        "wqkv": jnp.asarray(p["in_proj_w"].T, jnp.bfloat16),
        "bqkv": p["in_proj_b"].reshape(1, -1),
        "wo":   jnp.asarray(p["out_proj_w"].T, jnp.bfloat16),
        "bo":   p["out_proj_b"].reshape(1, -1),
        "w1":   jnp.asarray(p["lin1_w"].T, jnp.bfloat16),
        "b1":   p["lin1_b"].reshape(1, -1),
        "w2":   jnp.asarray(p["lin2_w"].T, jnp.bfloat16),
        "b2":   p["lin2_b"].reshape(1, -1),
        "ln1_g": p["ln1_g"].reshape(1, -1),
        "ln1_b": p["ln1_b"].reshape(1, -1),
        "ln2_g": p["ln2_g"].reshape(1, -1),
        "ln2_b": p["ln2_b"].reshape(1, -1),
    }


# ---------------------------------------------------------------------------
# Pure-JAX float32 reference (PyTorch eval-mode semantics) for validation
# ---------------------------------------------------------------------------

def _ref_layernorm(x, g, b, eps=1e-5):
    mu = jnp.mean(x, axis=-1, keepdims=True)
    var = jnp.mean(jnp.square(x - mu), axis=-1, keepdims=True)
    return (x - mu) / jnp.sqrt(var + eps) * g + b


def ref_encoder_layer(x, p, n_head):
    S, B, D = x.shape
    Dh = D // n_head
    x2 = x.reshape(S * B, D)
    qkv = x2 @ p["in_proj_w"].T + p["in_proj_b"]
    q, k, v = jnp.split(qkv, 3, axis=-1)

    def heads(t):
        return t.reshape(S, B, n_head, Dh).transpose(1, 2, 0, 3)   # (B,H,S,Dh)

    q, k, v = heads(q), heads(k), heads(v)
    s = jnp.einsum("bhqd,bhkd->bhqk", q, k) / math.sqrt(Dh)
    a = jax.nn.softmax(s, axis=-1)
    o = jnp.einsum("bhqk,bhkd->bhqd", a, v)
    o = o.transpose(2, 0, 1, 3).reshape(S * B, D)
    o = o @ p["out_proj_w"].T + p["out_proj_b"]
    x2 = _ref_layernorm(x2 + o, p["ln1_g"], p["ln1_b"])
    h = jnp.maximum(x2 @ p["lin1_w"].T + p["lin1_b"], 0.0)
    f = h @ p["lin2_w"].T + p["lin2_b"]
    x2 = _ref_layernorm(x2 + f, p["ln2_g"], p["ln2_b"])
    return x2.reshape(S, B, D)


def ref_encoder(x, layer_params, n_head):
    for p in layer_params:
        x = ref_encoder_layer(x, p, n_head)
    return x


# ---------------------------------------------------------------------------
# Demo
# ---------------------------------------------------------------------------

if __name__ == "__main__":
    d_model_part, n_head_part = 32, 4
    d_model_seq, n_head_seq = 16, 2
    n_layers_part, n_layers_seq = 2, 2
    dim_ff = 64   # TODO(synk): PyTorch default dim_feedforward is 2048; shrunk for the synthetic test
    S_part, S_seq, B = 8, 8, 2

    key = jax.random.PRNGKey(0)
    k_pp, k_sp, k_part, k_seq = jax.random.split(key, 4)

    part_raw = [init_layer_params(k, d_model_part, dim_ff)
                for k in jax.random.split(k_pp, n_layers_part)]
    seq_raw = [init_layer_params(k, d_model_seq, dim_ff)
               for k in jax.random.split(k_sp, n_layers_seq)]
    part_layers = [prep_layer_params(p) for p in part_raw]
    seq_layers = [prep_layer_params(p) for p in seq_raw]

    in_part = jax.random.normal(k_part, (S_part, B, d_model_part), jnp.float32)
    in_seq = jax.random.normal(k_seq, (S_seq, B, d_model_seq), jnp.float32)

    out_part, out_seq = transformer_encoder_part_seq(
        in_part, in_seq, part_layers, seq_layers, n_head_part, n_head_seq)
    jax.block_until_ready(out_part)
    jax.block_until_ready(out_seq)

    assert out_part.shape == in_part.shape
    assert out_seq.shape == in_seq.shape
    assert bool(jnp.all(jnp.isfinite(out_part))) and bool(jnp.all(jnp.isfinite(out_seq)))

    # Validate against the pure-JAX float32 reference (bf16 MXU feeds + approx
    # reciprocal introduce a small, bounded error -> loose tolerance).
    ref_part = ref_encoder(in_part, part_raw, n_head_part)
    ref_seq = ref_encoder(in_seq, seq_raw, n_head_seq)
    err = max(float(jnp.max(jnp.abs(out_part - ref_part))),
              float(jnp.max(jnp.abs(out_seq - ref_seq))))
    assert err < 0.1, f"mismatch vs reference: max abs err = {err}"

    print("KERNEL_OK")
</pallas_src>

<mosaic_0001>
module attributes {stable_mosaic.version = 11 : i64} {
  func.func @_encoder_layer_kernel(%arg0: i32, %arg1: memref<1x8x32xf32, #tpu.memory_space<vmem>>, %arg2: memref<32x96xbf16, #tpu.memory_space<vmem>>, %arg3: memref<1x96xf32, #tpu.memory_space<vmem>>, %arg4: memref<32x32xbf16, #tpu.memory_space<vmem>>, %arg5: memref<1x32xf32, #tpu.memory_space<vmem>>, %arg6: memref<1x32xf32, #tpu.memory_space<vmem>>, %arg7: memref<1x32xf32, #tpu.memory_space<vmem>>, %arg8: memref<32x64xbf16, #tpu.memory_space<vmem>>, %arg9: memref<1x64xf32, #tpu.memory_space<vmem>>, %arg10: memref<64x32xbf16, #tpu.memory_space<vmem>>, %arg11: memref<1x32xf32, #tpu.memory_space<vmem>>, %arg12: memref<1x32xf32, #tpu.memory_space<vmem>>, %arg13: memref<1x32xf32, #tpu.memory_space<vmem>>, %arg14: memref<1x8x32xf32, #tpu.memory_space<vmem>>) attributes {dimension_semantics = [#tpu.dimension_semantics<parallel>], iteration_bounds = array<i64: 2>, scalar_prefetch = 0 : i64, scratch_operands = 0 : i64, tpu.core_type = #tpu.core_type<tc>, window_params = [{transform_indices = @transform_0, window_bounds = array<i64: 1, 8, 32>}, {pipeline_mode = #tpu.pipeline_mode<synchronous>, transform_indices = @transform_1, window_bounds = array<i64: 32, 96>}, {pipeline_mode = #tpu.pipeline_mode<synchronous>, transform_indices = @transform_2, window_bounds = array<i64: 1, 96>}, {pipeline_mode = #tpu.pipeline_mode<synchronous>, transform_indices = @transform_3, window_bounds = array<i64: 32, 32>}, {pipeline_mode = #tpu.pipeline_mode<synchronous>, transform_indices = @transform_4, window_bounds = array<i64: 1, 32>}, {pipeline_mode = #tpu.pipeline_mode<synchronous>, transform_indices = @transform_5, window_bounds = array<i64: 1, 32>}, {pipeline_mode = #tpu.pipeline_mode<synchronous>, transform_indices = @transform_6, window_bounds = array<i64: 1, 32>}, {pipeline_mode = #tpu.pipeline_mode<synchronous>, transform_indices = @transform_7, window_bounds = array<i64: 32, 64>}, {pipeline_mode = #tpu.pipeline_mode<synchronous>, transform_indices = @transform_8, window_bounds = array<i64: 1, 64>}, {pipeline_mode = #tpu.pipeline_mode<synchronous>, transform_indices = @transform_9, window_bounds = array<i64: 64, 32>}, {pipeline_mode = #tpu.pipeline_mode<synchronous>, transform_indices = @transform_10, window_bounds = array<i64: 1, 32>}, {pipeline_mode = #tpu.pipeline_mode<synchronous>, transform_indices = @transform_11, window_bounds = array<i64: 1, 32>}, {pipeline_mode = #tpu.pipeline_mode<synchronous>, transform_indices = @transform_12, window_bounds = array<i64: 1, 32>}, {transform_indices = @transform_13, window_bounds = array<i64: 1, 8, 32>}]} {
    %c0 = arith.constant 0 : index
    %c0_0 = arith.constant 0 : index
    %c0_1 = arith.constant 0 : index
    %0 = vector.load %arg1[%c0, %c0_0, %c0_1] : memref<1x8x32xf32, #tpu.memory_space<vmem>>, vector<1x8x32xf32>
    %1 = vector.shape_cast %0 : vector<1x8x32xf32> to vector<8x32xf32>
    %2 = arith.truncf %1 : vector<8x32xf32> to vector<8x32xbf16>
    %c0_2 = arith.constant 0 : index
    %c0_3 = arith.constant 0 : index
    %3 = vector.load %arg2[%c0_2, %c0_3] : memref<32x96xbf16, #tpu.memory_space<vmem>>, vector<32x96xbf16>
    %cst = arith.constant dense<0.000000e+00> : vector<8x96xf32>
    %4 = tpu.matmul %2, %3, %cst {dimension_numbers = #tpu.dot_dimension_numbers<[1], [0], [0], [1], [0, 0, 1, 1], [], []>} : vector<8x32xbf16>, vector<32x96xbf16>, vector<8x96xf32> -> vector<8x96xf32>
    %c0_4 = arith.constant 0 : index
    %c0_5 = arith.constant 0 : index
    %5 = vector.load %arg3[%c0_4, %c0_5] : memref<1x96xf32, #tpu.memory_space<vmem>>, vector<1x96xf32>
    %6 = vector.broadcast %5 : vector<1x96xf32> to vector<8x96xf32>
    %7 = arith.addf %4, %6 : vector<8x96xf32>
    %8 = vector.extract_strided_slice %7 {offsets = [0, 0], sizes = [8, 32], strides = [1, 1]} : vector<8x96xf32> to vector<8x32xf32>
    %9 = vector.extract_strided_slice %7 {offsets = [0, 32], sizes = [8, 32], strides = [1, 1]} : vector<8x96xf32> to vector<8x32xf32>
    %10 = vector.extract_strided_slice %7 {offsets = [0, 64], sizes = [8, 32], strides = [1, 1]} : vector<8x96xf32> to vector<8x32xf32>
    %c0_6 = arith.constant 0 : index
    %c0_7 = arith.constant 0 : index
    %11 = vector.load %arg4[%c0_6, %c0_7] : memref<32x32xbf16, #tpu.memory_space<vmem>>, vector<32x32xbf16>
    %cst_8 = arith.constant 0.000000e+00 : f32
    %12 = vector.broadcast %cst_8 : f32 to vector<8x32xf32>
    %13 = vector.extract_strided_slice %8 {offsets = [0, 0], sizes = [8, 8], strides = [1, 1]} : vector<8x32xf32> to vector<8x8xf32>
    %14 = arith.truncf %13 : vector<8x8xf32> to vector<8x8xbf16>
    %15 = vector.extract_strided_slice %9 {offsets = [0, 0], sizes = [8, 8], strides = [1, 1]} : vector<8x32xf32> to vector<8x8xf32>
    %16 = arith.truncf %15 : vector<8x8xf32> to vector<8x8xbf16>
    %17 = vector.extract_strided_slice %10 {offsets = [0, 0], sizes = [8, 8], strides = [1, 1]} : vector<8x32xf32> to vector<8x8xf32>
    %18 = arith.truncf %17 : vector<8x8xf32> to vector<8x8xbf16>
    %cst_9 = arith.constant dense<0.000000e+00> : vector<8x8xf32>
    %19 = tpu.matmul %14, %16, %cst_9 {dimension_numbers = #tpu.dot_dimension_numbers<[1], [1], [0], [0], [0, 0, 1, 0], [], []>} : vector<8x8xbf16>, vector<8x8xbf16>, vector<8x8xf32> -> vector<8x8xf32>
    %cst_10 = arith.constant 0.353553385 : f32
    %20 = vector.broadcast %cst_10 : f32 to vector<8x8xf32>
    %21 = arith.mulf %19, %20 : vector<8x8xf32>
    %cst_11 = arith.constant dense<0xFF800000> : vector<8xf32>
    %22 = vector.multi_reduction <maximumf>, %21, %cst_11 [1] : vector<8x8xf32> to vector<8xf32>
    %23 = vector.shape_cast %22 : vector<8xf32> to vector<8x1xf32>
    %24 = vector.broadcast %23 : vector<8x1xf32> to vector<8x8xf32>
    %25 = arith.subf %21, %24 : vector<8x8xf32>
    %26 = math.exp %25 : vector<8x8xf32>
    %cst_12 = arith.constant dense<0.000000e+00> : vector<8xf32>
    %27 = vector.multi_reduction <add>, %26, %cst_12 [1] : vector<8x8xf32> to vector<8xf32>
    %28 = vector.shape_cast %27 : vector<8xf32> to vector<8x1xf32>
    %29 = tpu.reciprocal %28 {approx = true} : vector<8x1xf32> -> vector<8x1xf32>
    %30 = vector.broadcast %29 : vector<8x1xf32> to vector<8x8xf32>
    %31 = arith.mulf %26, %30 : vector<8x8xf32>
    %32 = arith.truncf %31 : vector<8x8xf32> to vector<8x8xbf16>
    %cst_13 = arith.constant dense<0.000000e+00> : vector<8x8xf32>
    %33 = tpu.matmul %32, %18, %cst_13 {dimension_numbers = #tpu.dot_dimension_numbers<[1], [0], [0], [1], [0, 0, 1, 1], [], []>} : vector<8x8xbf16>, vector<8x8xbf16>, vector<8x8xf32> -> vector<8x8xf32>
    %34 = arith.truncf %33 : vector<8x8xf32> to vector<8x8xbf16>
    %35 = vector.extract_strided_slice %11 {offsets = [0, 0], sizes = [8, 32], strides = [1, 1]} : vector<32x32xbf16> to vector<8x32xbf16>
    %cst_14 = arith.constant dense<0.000000e+00> : vector<8x32xf32>
    %36 = tpu.matmul %34, %35, %cst_14 {dimension_numbers = #tpu.dot_dimension_numbers<[1], [0], [0], [1], [0, 0, 1, 1], [], []>} : vector<8x8xbf16>, vector<8x32xbf16>, vector<8x32xf32> -> vector<8x32xf32>
    %37 = arith.addf %12, %36 : vector<8x32xf32>
    %38 = vector.extract_strided_slice %8 {offsets = [0, 8], sizes = [8, 8], strides = [1, 1]} : vector<8x32xf32> to vector<8x8xf32>
    %39 = arith.truncf %38 : vector<8x8xf32> to vector<8x8xbf16>
    %40 = vector.extract_strided_slice %9 {offsets = [0, 8], sizes = [8, 8], strides = [1, 1]} : vector<8x32xf32> to vector<8x8xf32>
    %41 = arith.truncf %40 : vector<8x8xf32> to vector<8x8xbf16>
    %42 = vector.extract_strided_slice %10 {offsets = [0, 8], sizes = [8, 8], strides = [1, 1]} : vector<8x32xf32> to vector<8x8xf32>
    %43 = arith.truncf %42 : vector<8x8xf32> to vector<8x8xbf16>
    %cst_15 = arith.constant dense<0.000000e+00> : vector<8x8xf32>
    %44 = tpu.matmul %39, %41, %cst_15 {dimension_numbers = #tpu.dot_dimension_numbers<[1], [1], [0], [0], [0, 0, 1, 0], [], []>} : vector<8x8xbf16>, vector<8x8xbf16>, vector<8x8xf32> -> vector<8x8xf32>
    %cst_16 = arith.constant 0.353553385 : f32
    %45 = vector.broadcast %cst_16 : f32 to vector<8x8xf32>
    %46 = arith.mulf %44, %45 : vector<8x8xf32>
    %cst_17 = arith.constant dense<0xFF800000> : vector<8xf32>
    %47 = vector.multi_reduction <maximumf>, %46, %cst_17 [1] : vector<8x8xf32> to vector<8xf32>
    %48 = vector.shape_cast %47 : vector<8xf32> to vector<8x1xf32>
    %49 = vector.broadcast %48 : vector<8x1xf32> to vector<8x8xf32>
    %50 = arith.subf %46, %49 : vector<8x8xf32>
    %51 = math.exp %50 : vector<8x8xf32>
    %cst_18 = arith.constant dense<0.000000e+00> : vector<8xf32>
    %52 = vector.multi_reduction <add>, %51, %cst_18 [1] : vector<8x8xf32> to vector<8xf32>
    %53 = vector.shape_cast %52 : vector<8xf32> to vector<8x1xf32>
    %54 = tpu.reciprocal %53 {approx = true} : vector<8x1xf32> -> vector<8x1xf32>
    %55 = vector.broadcast %54 : vector<8x1xf32> to vector<8x8xf32>
    %56 = arith.mulf %51, %55 : vector<8x8xf32>
    %57 = arith.truncf %56 : vector<8x8xf32> to vector<8x8xbf16>
    %cst_19 = arith.constant dense<0.000000e+00> : vector<8x8xf32>
    %58 = tpu.matmul %57, %43, %cst_19 {dimension_numbers = #tpu.dot_dimension_numbers<[1], [0], [0], [1], [0, 0, 1, 1], [], []>} : vector<8x8xbf16>, vector<8x8xbf16>, vector<8x8xf32> -> vector<8x8xf32>
    %59 = arith.truncf %58 : vector<8x8xf32> to vector<8x8xbf16>
    %60 = vector.extract_strided_slice %11 {offsets = [8, 0], sizes = [8, 32], strides = [1, 1]} : vector<32x32xbf16> to vector<8x32xbf16>
    %cst_20 = arith.constant dense<0.000000e+00> : vector<8x32xf32>
    %61 = tpu.matmul %59, %60, %cst_20 {dimension_numbers = #tpu.dot_dimension_numbers<[1], [0], [0], [1], [0, 0, 1, 1], [], []>} : vector<8x8xbf16>, vector<8x32xbf16>, vector<8x32xf32> -> vector<8x32xf32>
    %62 = arith.addf %37, %61 : vector<8x32xf32>
    %63 = vector.extract_strided_slice %8 {offsets = [0, 16], sizes = [8, 8], strides = [1, 1]} : vector<8x32xf32> to vector<8x8xf32>
    %64 = arith.truncf %63 : vector<8x8xf32> to vector<8x8xbf16>
    %65 = vector.extract_strided_slice %9 {offsets = [0, 16], sizes = [8, 8], strides = [1, 1]} : vector<8x32xf32> to vector<8x8xf32>
    %66 = arith.truncf %65 : vector<8x8xf32> to vector<8x8xbf16>
    %67 = vector.extract_strided_slice %10 {offsets = [0, 16], sizes = [8, 8], strides = [1, 1]} : vector<8x32xf32> to vector<8x8xf32>
    %68 = arith.truncf %67 : vector<8x8xf32> to vector<8x8xbf16>
    %cst_21 = arith.constant dense<0.000000e+00> : vector<8x8xf32>
    %69 = tpu.matmul %64, %66, %cst_21 {dimension_numbers = #tpu.dot_dimension_numbers<[1], [1], [0], [0], [0, 0, 1, 0], [], []>} : vector<8x8xbf16>, vector<8x8xbf16>, vector<8x8xf32> -> vector<8x8xf32>
    %cst_22 = arith.constant 0.353553385 : f32
    %70 = vector.broadcast %cst_22 : f32 to vector<8x8xf32>
    %71 = arith.mulf %69, %70 : vector<8x8xf32>
    %cst_23 = arith.constant dense<0xFF800000> : vector<8xf32>
    %72 = vector.multi_reduction <maximumf>, %71, %cst_23 [1] : vector<8x8xf32> to vector<8xf32>
    %73 = vector.shape_cast %72 : vector<8xf32> to vector<8x1xf32>
    %74 = vector.broadcast %73 : vector<8x1xf32> to vector<8x8xf32>
    %75 = arith.subf %71, %74 : vector<8x8xf32>
    %76 = math.exp %75 : vector<8x8xf32>
    %cst_24 = arith.constant dense<0.000000e+00> : vector<8xf32>
    %77 = vector.multi_reduction <add>, %76, %cst_24 [1] : vector<8x8xf32> to vector<8xf32>
    %78 = vector.shape_cast %77 : vector<8xf32> to vector<8x1xf32>
    %79 = tpu.reciprocal %78 {approx = true} : vector<8x1xf32> -> vector<8x1xf32>
    %80 = vector.broadcast %79 : vector<8x1xf32> to vector<8x8xf32>
    %81 = arith.mulf %76, %80 : vector<8x8xf32>
    %82 = arith.truncf %81 : vector<8x8xf32> to vector<8x8xbf16>
    %cst_25 = arith.constant dense<0.000000e+00> : vector<8x8xf32>
    %83 = tpu.matmul %82, %68, %cst_25 {dimension_numbers = #tpu.dot_dimension_numbers<[1], [0], [0], [1], [0, 0, 1, 1], [], []>} : vector<8x8xbf16>, vector<8x8xbf16>, vector<8x8xf32> -> vector<8x8xf32>
    %84 = arith.truncf %83 : vector<8x8xf32> to vector<8x8xbf16>
    %85 = vector.extract_strided_slice %11 {offsets = [16, 0], sizes = [8, 32], strides = [1, 1]} : vector<32x32xbf16> to vector<8x32xbf16>
    %cst_26 = arith.constant dense<0.000000e+00> : vector<8x32xf32>
    %86 = tpu.matmul %84, %85, %cst_26 {dimension_numbers = #tpu.dot_dimension_numbers<[1], [0], [0], [1], [0, 0, 1, 1], [], []>} : vector<8x8xbf16>, vector<8x32xbf16>, vector<8x32xf32> -> vector<8x32xf32>
    %87 = arith.addf %62, %86 : vector<8x32xf32>
    %88 = vector.extract_strided_slice %8 {offsets = [0, 24], sizes = [8, 8], strides = [1, 1]} : vector<8x32xf32> to vector<8x8xf32>
    %89 = arith.truncf %88 : vector<8x8xf32> to vector<8x8xbf16>
    %90 = vector.extract_strided_slice %9 {offsets = [0, 24], sizes = [8, 8], strides = [1, 1]} : vector<8x32xf32> to vector<8x8xf32>
    %91 = arith.truncf %90 : vector<8x8xf32> to vector<8x8xbf16>
    %92 = vector.extract_strided_slice %10 {offsets = [0, 24], sizes = [8, 8], strides = [1, 1]} : vector<8x32xf32> to vector<8x8xf32>
    %93 = arith.truncf %92 : vector<8x8xf32> to vector<8x8xbf16>
    %cst_27 = arith.constant dense<0.000000e+00> : vector<8x8xf32>
    %94 = tpu.matmul %89, %91, %cst_27 {dimension_numbers = #tpu.dot_dimension_numbers<[1], [1], [0], [0], [0, 0, 1, 0], [], []>} : vector<8x8xbf16>, vector<8x8xbf16>, vector<8x8xf32> -> vector<8x8xf32>
    %cst_28 = arith.constant 0.353553385 : f32
    %95 = vector.broadcast %cst_28 : f32 to vector<8x8xf32>
    %96 = arith.mulf %94, %95 : vector<8x8xf32>
    %cst_29 = arith.constant dense<0xFF800000> : vector<8xf32>
    %97 = vector.multi_reduction <maximumf>, %96, %cst_29 [1] : vector<8x8xf32> to vector<8xf32>
    %98 = vector.shape_cast %97 : vector<8xf32> to vector<8x1xf32>
    %99 = vector.broadcast %98 : vector<8x1xf32> to vector<8x8xf32>
    %100 = arith.subf %96, %99 : vector<8x8xf32>
    %101 = math.exp %100 : vector<8x8xf32>
    %cst_30 = arith.constant dense<0.000000e+00> : vector<8xf32>
    %102 = vector.multi_reduction <add>, %101, %cst_30 [1] : vector<8x8xf32> to vector<8xf32>
    %103 = vector.shape_cast %102 : vector<8xf32> to vector<8x1xf32>
    %104 = tpu.reciprocal %103 {approx = true} : vector<8x1xf32> -> vector<8x1xf32>
    %105 = vector.broadcast %104 : vector<8x1xf32> to vector<8x8xf32>
    %106 = arith.mulf %101, %105 : vector<8x8xf32>
    %107 = arith.truncf %106 : vector<8x8xf32> to vector<8x8xbf16>
    %cst_31 = arith.constant dense<0.000000e+00> : vector<8x8xf32>
    %108 = tpu.matmul %107, %93, %cst_31 {dimension_numbers = #tpu.dot_dimension_numbers<[1], [0], [0], [1], [0, 0, 1, 1], [], []>} : vector<8x8xbf16>, vector<8x8xbf16>, vector<8x8xf32> -> vector<8x8xf32>
    %109 = arith.truncf %108 : vector<8x8xf32> to vector<8x8xbf16>
    %110 = vector.extract_strided_slice %11 {offsets = [24, 0], sizes = [8, 32], strides = [1, 1]} : vector<32x32xbf16> to vector<8x32xbf16>
    %cst_32 = arith.constant dense<0.000000e+00> : vector<8x32xf32>
    %111 = tpu.matmul %109, %110, %cst_32 {dimension_numbers = #tpu.dot_dimension_numbers<[1], [0], [0], [1], [0, 0, 1, 1], [], []>} : vector<8x8xbf16>, vector<8x32xbf16>, vector<8x32xf32> -> vector<8x32xf32>
    %112 = arith.addf %87, %111 : vector<8x32xf32>
    %c0_33 = arith.constant 0 : index
    %c0_34 = arith.constant 0 : index
    %113 = vector.load %arg5[%c0_33, %c0_34] : memref<1x32xf32, #tpu.memory_space<vmem>>, vector<1x32xf32>
    %114 = vector.broadcast %113 : vector<1x32xf32> to vector<8x32xf32>
    %115 = arith.addf %112, %114 : vector<8x32xf32>
    %116 = arith.addf %1, %115 : vector<8x32xf32>
    %c0_35 = arith.constant 0 : index
    %c0_36 = arith.constant 0 : index
    %117 = vector.load %arg6[%c0_35, %c0_36] : memref<1x32xf32, #tpu.memory_space<vmem>>, vector<1x32xf32>
    %c0_37 = arith.constant 0 : index
    %c0_38 = arith.constant 0 : index
    %118 = vector.load %arg7[%c0_37, %c0_38] : memref<1x32xf32, #tpu.memory_space<vmem>>, vector<1x32xf32>
    %cst_39 = arith.constant dense<0.000000e+00> : vector<8xf32>
    %119 = vector.multi_reduction <add>, %116, %cst_39 [1] : vector<8x32xf32> to vector<8xf32>
    %120 = vector.shape_cast %119 : vector<8xf32> to vector<8x1xf32>
    %cst_40 = arith.constant 3.200000e+01 : f32
    %121 = vector.broadcast %cst_40 : f32 to vector<8x1xf32>
    %122 = arith.divf %120, %121 : vector<8x1xf32>
    %123 = vector.broadcast %122 : vector<8x1xf32> to vector<8x32xf32>
    %124 = arith.subf %116, %123 : vector<8x32xf32>
    %125 = arith.mulf %124, %124 : vector<8x32xf32>
    %cst_41 = arith.constant dense<0.000000e+00> : vector<8xf32>
    %126 = vector.multi_reduction <add>, %125, %cst_41 [1] : vector<8x32xf32> to vector<8xf32>
    %127 = vector.shape_cast %126 : vector<8xf32> to vector<8x1xf32>
    %cst_42 = arith.constant 3.200000e+01 : f32
    %128 = vector.broadcast %cst_42 : f32 to vector<8x1xf32>
    %129 = arith.divf %127, %128 : vector<8x1xf32>
    %130 = vector.broadcast %122 : vector<8x1xf32> to vector<8x32xf32>
    %131 = arith.subf %116, %130 : vector<8x32xf32>
    %cst_43 = arith.constant 9.99999974E-6 : f32
    %132 = vector.broadcast %cst_43 : f32 to vector<8x1xf32>
    %133 = arith.addf %129, %132 : vector<8x1xf32>
    %134 = math.rsqrt %133 : vector<8x1xf32>
    %135 = vector.broadcast %134 : vector<8x1xf32> to vector<8x32xf32>
    %136 = arith.mulf %131, %135 : vector<8x32xf32>
    %137 = vector.broadcast %117 : vector<1x32xf32> to vector<8x32xf32>
    %138 = arith.mulf %136, %137 : vector<8x32xf32>
    %139 = vector.broadcast %118 : vector<1x32xf32> to vector<8x32xf32>
    %140 = arith.addf %138, %139 : vector<8x32xf32>
    %141 = arith.truncf %140 : vector<8x32xf32> to vector<8x32xbf16>
    %c0_44 = arith.constant 0 : index
    %c0_45 = arith.constant 0 : index
    %142 = vector.load %arg8[%c0_44, %c0_45] : memref<32x64xbf16, #tpu.memory_space<vmem>>, vector<32x64xbf16>
    %cst_46 = arith.constant dense<0.000000e+00> : vector<8x64xf32>
    %143 = tpu.matmul %141, %142, %cst_46 {dimension_numbers = #tpu.dot_dimension_numbers<[1], [0], [0], [1], [0, 0, 1, 1], [], []>} : vector<8x32xbf16>, vector<32x64xbf16>, vector<8x64xf32> -> vector<8x64xf32>
    %c0_47 = arith.constant 0 : index
    %c0_48 = arith.constant 0 : index
    %144 = vector.load %arg9[%c0_47, %c0_48] : memref<1x64xf32, #tpu.memory_space<vmem>>, vector<1x64xf32>
    %145 = vector.broadcast %144 : vector<1x64xf32> to vector<8x64xf32>
    %146 = arith.addf %143, %145 : vector<8x64xf32>
    %cst_49 = arith.constant 0.000000e+00 : f32
    %147 = vector.broadcast %cst_49 : f32 to vector<8x64xf32>
    %148 = arith.maximumf %146, %147 : vector<8x64xf32>
    %149 = arith.truncf %148 : vector<8x64xf32> to vector<8x64xbf16>
    %c0_50 = arith.constant 0 : index
    %c0_51 = arith.constant 0 : index
    %150 = vector.load %arg10[%c0_50, %c0_51] : memref<64x32xbf16, #tpu.memory_space<vmem>>, vector<64x32xbf16>
    %cst_52 = arith.constant dense<0.000000e+00> : vector<8x32xf32>
    %151 = tpu.matmul %149, %150, %cst_52 {dimension_numbers = #tpu.dot_dimension_numbers<[1], [0], [0], [1], [0, 0, 1, 1], [], []>} : vector<8x64xbf16>, vector<64x32xbf16>, vector<8x32xf32> -> vector<8x32xf32>
    %c0_53 = arith.constant 0 : index
    %c0_54 = arith.constant 0 : index
    %152 = vector.load %arg11[%c0_53, %c0_54] : memref<1x32xf32, #tpu.memory_space<vmem>>, vector<1x32xf32>
    %153 = vector.broadcast %152 : vector<1x32xf32> to vector<8x32xf32>
    %154 = arith.addf %151, %153 : vector<8x32xf32>
    %155 = arith.addf %140, %154 : vector<8x32xf32>
    %c0_55 = arith.constant 0 : index
    %c0_56 = arith.constant 0 : index
    %156 = vector.load %arg12[%c0_55, %c0_56] : memref<1x32xf32, #tpu.memory_space<vmem>>, vector<1x32xf32>
    %c0_57 = arith.constant 0 : index
    %c0_58 = arith.constant 0 : index
    %157 = vector.load %arg13[%c0_57, %c0_58] : memref<1x32xf32, #tpu.memory_space<vmem>>, vector<1x32xf32>
    %cst_59 = arith.constant dense<0.000000e+00> : vector<8xf32>
    %158 = vector.multi_reduction <add>, %155, %cst_59 [1] : vector<8x32xf32> to vector<8xf32>
    %159 = vector.shape_cast %158 : vector<8xf32> to vector<8x1xf32>
    %cst_60 = arith.constant 3.200000e+01 : f32
    %160 = vector.broadcast %cst_60 : f32 to vector<8x1xf32>
    %161 = arith.divf %159, %160 : vector<8x1xf32>
    %162 = vector.broadcast %161 : vector<8x1xf32> to vector<8x32xf32>
    %163 = arith.subf %155, %162 : vector<8x32xf32>
    %164 = arith.mulf %163, %163 : vector<8x32xf32>
    %cst_61 = arith.constant dense<0.000000e+00> : vector<8xf32>
    %165 = vector.multi_reduction <add>, %164, %cst_61 [1] : vector<8x32xf32> to vector<8xf32>
    %166 = vector.shape_cast %165 : vector<8xf32> to vector<8x1xf32>
    %cst_62 = arith.constant 3.200000e+01 : f32
    %167 = vector.broadcast %cst_62 : f32 to vector<8x1xf32>
    %168 = arith.divf %166, %167 : vector<8x1xf32>
    %169 = vector.broadcast %161 : vector<8x1xf32> to vector<8x32xf32>
    %170 = arith.subf %155, %169 : vector<8x32xf32>
    %cst_63 = arith.constant 9.99999974E-6 : f32
    %171 = vector.broadcast %cst_63 : f32 to vector<8x1xf32>
    %172 = arith.addf %168, %171 : vector<8x1xf32>
    %173 = math.rsqrt %172 : vector<8x1xf32>
    %174 = vector.broadcast %173 : vector<8x1xf32> to vector<8x32xf32>
    %175 = arith.mulf %170, %174 : vector<8x32xf32>
    %176 = vector.broadcast %156 : vector<1x32xf32> to vector<8x32xf32>
    %177 = arith.mulf %175, %176 : vector<8x32xf32>
    %178 = vector.broadcast %157 : vector<1x32xf32> to vector<8x32xf32>
    %179 = arith.addf %177, %178 : vector<8x32xf32>
    %c0_64 = arith.constant 0 : index
    %c0_65 = arith.constant 0 : index
    %c0_66 = arith.constant 0 : index
    %180 = vector.load %arg14[%c0_64, %c0_65, %c0_66] : memref<1x8x32xf32, #tpu.memory_space<vmem>>, vector<1x8x32xf32>
    %181 = vector.shape_cast %180 : vector<1x8x32xf32> to vector<8x32xf32>
    %182 = vector.shape_cast %179 : vector<8x32xf32> to vector<1x8x32xf32>
    tpu.vector_store %arg14[%c0_64, %c0_65, %c0_66], %182 {strides = array<i32>} : memref<1x8x32xf32, #tpu.memory_space<vmem>>, vector<1x8x32xf32>,
    return
  }
  func.func @transform_0(%arg0: i32) -> (i32, i32, i32) {
    %c0_i32 = arith.constant 0 : i32
    %c0_i32_0 = arith.constant 0 : i32
    %c0_i32_1 = arith.constant 0 : i32
    return %arg0, %c0_i32, %c0_i32_0 : i32, i32, i32
  }
  func.func @transform_1(%arg0: i32) -> (i32, i32) {
    %c0_i32 = arith.constant 0 : i32
    %c0_i32_0 = arith.constant 0 : i32
    %c0_i32_1 = arith.constant 0 : i32
    return %c0_i32, %c0_i32_0 : i32, i32
  }
  func.func @transform_2(%arg0: i32) -> (i32, i32) {
    %c0_i32 = arith.constant 0 : i32
    %c0_i32_0 = arith.constant 0 : i32
    %c0_i32_1 = arith.constant 0 : i32
    return %c0_i32, %c0_i32_0 : i32, i32
  }
  func.func @transform_3(%arg0: i32) -> (i32, i32) {
    %c0_i32 = arith.constant 0 : i32
    %c0_i32_0 = arith.constant 0 : i32
    %c0_i32_1 = arith.constant 0 : i32
    return %c0_i32, %c0_i32_0 : i32, i32
  }
  func.func @transform_4(%arg0: i32) -> (i32, i32) {
    %c0_i32 = arith.constant 0 : i32
    %c0_i32_0 = arith.constant 0 : i32
    %c0_i32_1 = arith.constant 0 : i32
    return %c0_i32, %c0_i32_0 : i32, i32
  }
  func.func @transform_5(%arg0: i32) -> (i32, i32) {
    %c0_i32 = arith.constant 0 : i32
    %c0_i32_0 = arith.constant 0 : i32
    %c0_i32_1 = arith.constant 0 : i32
    return %c0_i32, %c0_i32_0 : i32, i32
  }
  func.func @transform_6(%arg0: i32) -> (i32, i32) {
    %c0_i32 = arith.constant 0 : i32
    %c0_i32_0 = arith.constant 0 : i32
    %c0_i32_1 = arith.constant 0 : i32
    return %c0_i32, %c0_i32_0 : i32, i32
  }
  func.func @transform_7(%arg0: i32) -> (i32, i32) {
    %c0_i32 = arith.constant 0 : i32
    %c0_i32_0 = arith.constant 0 : i32
    %c0_i32_1 = arith.constant 0 : i32
    return %c0_i32, %c0_i32_0 : i32, i32
  }
  func.func @transform_8(%arg0: i32) -> (i32, i32) {
    %c0_i32 = arith.constant 0 : i32
    %c0_i32_0 = arith.constant 0 : i32
    %c0_i32_1 = arith.constant 0 : i32
    return %c0_i32, %c0_i32_0 : i32, i32
  }
  func.func @transform_9(%arg0: i32) -> (i32, i32) {
    %c0_i32 = arith.constant 0 : i32
    %c0_i32_0 = arith.constant 0 : i32
    %c0_i32_1 = arith.constant 0 : i32
    return %c0_i32, %c0_i32_0 : i32, i32
  }
  func.func @transform_10(%arg0: i32) -> (i32, i32) {
    %c0_i32 = arith.constant 0 : i32
    %c0_i32_0 = arith.constant 0 : i32
    %c0_i32_1 = arith.constant 0 : i32
    return %c0_i32, %c0_i32_0 : i32, i32
  }
  func.func @transform_11(%arg0: i32) -> (i32, i32) {
    %c0_i32 = arith.constant 0 : i32
    %c0_i32_0 = arith.constant 0 : i32
    %c0_i32_1 = arith.constant 0 : i32
    return %c0_i32, %c0_i32_0 : i32, i32
  }
  func.func @transform_12(%arg0: i32) -> (i32, i32) {
    %c0_i32 = arith.constant 0 : i32
    %c0_i32_0 = arith.constant 0 : i32
    %c0_i32_1 = arith.constant 0 : i32
    return %c0_i32, %c0_i32_0 : i32, i32
  }
  func.func @transform_13(%arg0: i32) -> (i32, i32, i32) {
    %c0_i32 = arith.constant 0 : i32
    %c0_i32_0 = arith.constant 0 : i32
    %c0_i32_1 = arith.constant 0 : i32
    return %arg0, %c0_i32, %c0_i32_0 : i32, i32, i32
  }
}

module attributes {stable_mosaic.version = 11 : i64} {
  func.func @_encoder_layer_kernel(%arg0: i32, %arg1: memref<1x8x16xf32, #tpu.memory_space<vmem>>, %arg2: memref<16x48xbf16, #tpu.memory_space<vmem>>, %arg3: memref<1x48xf32, #tpu.memory_space<vmem>>, %arg4: memref<16x16xbf16, #tpu.memory_space<vmem>>, %arg5: memref<1x16xf32, #tpu.memory_space<vmem>>, %arg6: memref<1x16xf32, #tpu.memory_space<vmem>>, %arg7: memref<1x16xf32, #tpu.memory_space<vmem>>, %arg8: memref<16x64xbf16, #tpu.memory_space<vmem>>, %arg9: memref<1x64xf32, #tpu.memory_space<vmem>>, %arg10: memref<64x16xbf16, #tpu.memory_space<vmem>>, %arg11: memref<1x16xf32, #tpu.memory_space<vmem>>, %arg12: memref<1x16xf32, #tpu.memory_space<vmem>>, %arg13: memref<1x16xf32, #tpu.memory_space<vmem>>, %arg14: memref<1x8x16xf32, #tpu.memory_space<vmem>>) attributes {dimension_semantics = [#tpu.dimension_semantics<parallel>], iteration_bounds = array<i64: 2>, scalar_prefetch = 0 : i64, scratch_operands = 0 : i64, tpu.core_type = #tpu.core_type<tc>, window_params = [{transform_indices = @transform_0, window_bounds = array<i64: 1, 8, 16>}, {pipeline_mode = #tpu.pipeline_mode<synchronous>, transform_indices = @transform_1, window_bounds = array<i64: 16, 48>}, {pipeline_mode = #tpu.pipeline_mode<synchronous>, transform_indices = @transform_2, window_bounds = array<i64: 1, 48>}, {pipeline_mode = #tpu.pipeline_mode<synchronous>, transform_indices = @transform_3, window_bounds = array<i64: 16, 16>}, {pipeline_mode = #tpu.pipeline_mode<synchronous>, transform_indices = @transform_4, window_bounds = array<i64: 1, 16>}, {pipeline_mode = #tpu.pipeline_mode<synchronous>, transform_indices = @transform_5, window_bounds = array<i64: 1, 16>}, {pipeline_mode = #tpu.pipeline_mode<synchronous>, transform_indices = @transform_6, window_bounds = array<i64: 1, 16>}, {pipeline_mode = #tpu.pipeline_mode<synchronous>, transform_indices = @transform_7, window_bounds = array<i64: 16, 64>}, {pipeline_mode = #tpu.pipeline_mode<synchronous>, transform_indices = @transform_8, window_bounds = array<i64: 1, 64>}, {pipeline_mode = #tpu.pipeline_mode<synchronous>, transform_indices = @transform_9, window_bounds = array<i64: 64, 16>}, {pipeline_mode = #tpu.pipeline_mode<synchronous>, transform_indices = @transform_10, window_bounds = array<i64: 1, 16>}, {pipeline_mode = #tpu.pipeline_mode<synchronous>, transform_indices = @transform_11, window_bounds = array<i64: 1, 16>}, {pipeline_mode = #tpu.pipeline_mode<synchronous>, transform_indices = @transform_12, window_bounds = array<i64: 1, 16>}, {transform_indices = @transform_13, window_bounds = array<i64: 1, 8, 16>}]} {
    %c0 = arith.constant 0 : index
    %c0_0 = arith.constant 0 : index
    %c0_1 = arith.constant 0 : index
    %0 = vector.load %arg1[%c0, %c0_0, %c0_1] : memref<1x8x16xf32, #tpu.memory_space<vmem>>, vector<1x8x16xf32>
    %1 = vector.shape_cast %0 : vector<1x8x16xf32> to vector<8x16xf32>
    %2 = arith.truncf %1 : vector<8x16xf32> to vector<8x16xbf16>
    %c0_2 = arith.constant 0 : index
    %c0_3 = arith.constant 0 : index
    %3 = vector.load %arg2[%c0_2, %c0_3] : memref<16x48xbf16, #tpu.memory_space<vmem>>, vector<16x48xbf16>
    %cst = arith.constant dense<0.000000e+00> : vector<8x48xf32>
    %4 = tpu.matmul %2, %3, %cst {dimension_numbers = #tpu.dot_dimension_numbers<[1], [0], [0], [1], [0, 0, 1, 1], [], []>} : vector<8x16xbf16>, vector<16x48xbf16>, vector<8x48xf32> -> vector<8x48xf32>
    %c0_4 = arith.constant 0 : index
    %c0_5 = arith.constant 0 : index
    %5 = vector.load %arg3[%c0_4, %c0_5] : memref<1x48xf32, #tpu.memory_space<vmem>>, vector<1x48xf32>
    %6 = vector.broadcast %5 : vector<1x48xf32> to vector<8x48xf32>
    %7 = arith.addf %4, %6 : vector<8x48xf32>
    %8 = vector.extract_strided_slice %7 {offsets = [0, 0], sizes = [8, 16], strides = [1, 1]} : vector<8x48xf32> to vector<8x16xf32>
    %9 = vector.extract_strided_slice %7 {offsets = [0, 16], sizes = [8, 16], strides = [1, 1]} : vector<8x48xf32> to vector<8x16xf32>
    %10 = vector.extract_strided_slice %7 {offsets = [0, 32], sizes = [8, 16], strides = [1, 1]} : vector<8x48xf32> to vector<8x16xf32>
    %c0_6 = arith.constant 0 : index
    %c0_7 = arith.constant 0 : index
    %11 = vector.load %arg4[%c0_6, %c0_7] : memref<16x16xbf16, #tpu.memory_space<vmem>>, vector<16x16xbf16>
    %cst_8 = arith.constant 0.000000e+00 : f32
    %12 = vector.broadcast %cst_8 : f32 to vector<8x16xf32>
    %13 = vector.extract_strided_slice %8 {offsets = [0, 0], sizes = [8, 8], strides = [1, 1]} : vector<8x16xf32> to vector<8x8xf32>
    %14 = arith.truncf %13 : vector<8x8xf32> to vector<8x8xbf16>
    %15 = vector.extract_strided_slice %9 {offsets = [0, 0], sizes = [8, 8], strides = [1, 1]} : vector<8x16xf32> to vector<8x8xf32>
    %16 = arith.truncf %15 : vector<8x8xf32> to vector<8x8xbf16>
    %17 = vector.extract_strided_slice %10 {offsets = [0, 0], sizes = [8, 8], strides = [1, 1]} : vector<8x16xf32> to vector<8x8xf32>
    %18 = arith.truncf %17 : vector<8x8xf32> to vector<8x8xbf16>
    %cst_9 = arith.constant dense<0.000000e+00> : vector<8x8xf32>
    %19 = tpu.matmul %14, %16, %cst_9 {dimension_numbers = #tpu.dot_dimension_numbers<[1], [1], [0], [0], [0, 0, 1, 0], [], []>} : vector<8x8xbf16>, vector<8x8xbf16>, vector<8x8xf32> -> vector<8x8xf32>
    %cst_10 = arith.constant 0.353553385 : f32
    %20 = vector.broadcast %cst_10 : f32 to vector<8x8xf32>
    %21 = arith.mulf %19, %20 : vector<8x8xf32>
    %cst_11 = arith.constant dense<0xFF800000> : vector<8xf32>
    %22 = vector.multi_reduction <maximumf>, %21, %cst_11 [1] : vector<8x8xf32> to vector<8xf32>
    %23 = vector.shape_cast %22 : vector<8xf32> to vector<8x1xf32>
    %24 = vector.broadcast %23 : vector<8x1xf32> to vector<8x8xf32>
    %25 = arith.subf %21, %24 : vector<8x8xf32>
    %26 = math.exp %25 : vector<8x8xf32>
    %cst_12 = arith.constant dense<0.000000e+00> : vector<8xf32>
    %27 = vector.multi_reduction <add>, %26, %cst_12 [1] : vector<8x8xf32> to vector<8xf32>
    %28 = vector.shape_cast %27 : vector<8xf32> to vector<8x1xf32>
    %29 = tpu.reciprocal %28 {approx = true} : vector<8x1xf32> -> vector<8x1xf32>
    %30 = vector.broadcast %29 : vector<8x1xf32> to vector<8x8xf32>
    %31 = arith.mulf %26, %30 : vector<8x8xf32>
    %32 = arith.truncf %31 : vector<8x8xf32> to vector<8x8xbf16>
    %cst_13 = arith.constant dense<0.000000e+00> : vector<8x8xf32>
    %33 = tpu.matmul %32, %18, %cst_13 {dimension_numbers = #tpu.dot_dimension_numbers<[1], [0], [0], [1], [0, 0, 1, 1], [], []>} : vector<8x8xbf16>, vector<8x8xbf16>, vector<8x8xf32> -> vector<8x8xf32>
    %34 = arith.truncf %33 : vector<8x8xf32> to vector<8x8xbf16>
    %35 = vector.extract_strided_slice %11 {offsets = [0, 0], sizes = [8, 16], strides = [1, 1]} : vector<16x16xbf16> to vector<8x16xbf16>
    %cst_14 = arith.constant dense<0.000000e+00> : vector<8x16xf32>
    %36 = tpu.matmul %34, %35, %cst_14 {dimension_numbers = #tpu.dot_dimension_numbers<[1], [0], [0], [1], [0, 0, 1, 1], [], []>} : vector<8x8xbf16>, vector<8x16xbf16>, vector<8x16xf32> -> vector<8x16xf32>
    %37 = arith.addf %12, %36 : vector<8x16xf32>
    %38 = vector.extract_strided_slice %8 {offsets = [0, 8], sizes = [8, 8], strides = [1, 1]} : vector<8x16xf32> to vector<8x8xf32>
    %39 = arith.truncf %38 : vector<8x8xf32> to vector<8x8xbf16>
    %40 = vector.extract_strided_slice %9 {offsets = [0, 8], sizes = [8, 8], strides = [1, 1]} : vector<8x16xf32> to vector<8x8xf32>
    %41 = arith.truncf %40 : vector<8x8xf32> to vector<8x8xbf16>
    %42 = vector.extract_strided_slice %10 {offsets = [0, 8], sizes = [8, 8], strides = [1, 1]} : vector<8x16xf32> to vector<8x8xf32>
    %43 = arith.truncf %42 : vector<8x8xf32> to vector<8x8xbf16>
    %cst_15 = arith.constant dense<0.000000e+00> : vector<8x8xf32>
    %44 = tpu.matmul %39, %41, %cst_15 {dimension_numbers = #tpu.dot_dimension_numbers<[1], [1], [0], [0], [0, 0, 1, 0], [], []>} : vector<8x8xbf16>, vector<8x8xbf16>, vector<8x8xf32> -> vector<8x8xf32>
    %cst_16 = arith.constant 0.353553385 : f32
    %45 = vector.broadcast %cst_16 : f32 to vector<8x8xf32>
    %46 = arith.mulf %44, %45 : vector<8x8xf32>
    %cst_17 = arith.constant dense<0xFF800000> : vector<8xf32>
    %47 = vector.multi_reduction <maximumf>, %46, %cst_17 [1] : vector<8x8xf32> to vector<8xf32>
    %48 = vector.shape_cast %47 : vector<8xf32> to vector<8x1xf32>
    %49 = vector.broadcast %48 : vector<8x1xf32> to vector<8x8xf32>
    %50 = arith.subf %46, %49 : vector<8x8xf32>
    %51 = math.exp %50 : vector<8x8xf32>
    %cst_18 = arith.constant dense<0.000000e+00> : vector<8xf32>
    %52 = vector.multi_reduction <add>, %51, %cst_18 [1] : vector<8x8xf32> to vector<8xf32>
    %53 = vector.shape_cast %52 : vector<8xf32> to vector<8x1xf32>
    %54 = tpu.reciprocal %53 {approx = true} : vector<8x1xf32> -> vector<8x1xf32>
    %55 = vector.broadcast %54 : vector<8x1xf32> to vector<8x8xf32>
    %56 = arith.mulf %51, %55 : vector<8x8xf32>
    %57 = arith.truncf %56 : vector<8x8xf32> to vector<8x8xbf16>
    %cst_19 = arith.constant dense<0.000000e+00> : vector<8x8xf32>
    %58 = tpu.matmul %57, %43, %cst_19 {dimension_numbers = #tpu.dot_dimension_numbers<[1], [0], [0], [1], [0, 0, 1, 1], [], []>} : vector<8x8xbf16>, vector<8x8xbf16>, vector<8x8xf32> -> vector<8x8xf32>
    %59 = arith.truncf %58 : vector<8x8xf32> to vector<8x8xbf16>
    %60 = vector.extract_strided_slice %11 {offsets = [8, 0], sizes = [8, 16], strides = [1, 1]} : vector<16x16xbf16> to vector<8x16xbf16>
    %cst_20 = arith.constant dense<0.000000e+00> : vector<8x16xf32>
    %61 = tpu.matmul %59, %60, %cst_20 {dimension_numbers = #tpu.dot_dimension_numbers<[1], [0], [0], [1], [0, 0, 1, 1], [], []>} : vector<8x8xbf16>, vector<8x16xbf16>, vector<8x16xf32> -> vector<8x16xf32>
    %62 = arith.addf %37, %61 : vector<8x16xf32>
    %c0_21 = arith.constant 0 : index
    %c0_22 = arith.constant 0 : index
    %63 = vector.load %arg5[%c0_21, %c0_22] : memref<1x16xf32, #tpu.memory_space<vmem>>, vector<1x16xf32>
    %64 = vector.broadcast %63 : vector<1x16xf32> to vector<8x16xf32>
    %65 = arith.addf %62, %64 : vector<8x16xf32>
    %66 = arith.addf %1, %65 : vector<8x16xf32>
    %c0_23 = arith.constant 0 : index
    %c0_24 = arith.constant 0 : index
    %67 = vector.load %arg6[%c0_23, %c0_24] : memref<1x16xf32, #tpu.memory_space<vmem>>, vector<1x16xf32>
    %c0_25 = arith.constant 0 : index
    %c0_26 = arith.constant 0 : index
    %68 = vector.load %arg7[%c0_25, %c0_26] : memref<1x16xf32, #tpu.memory_space<vmem>>, vector<1x16xf32>
    %cst_27 = arith.constant dense<0.000000e+00> : vector<8xf32>
    %69 = vector.multi_reduction <add>, %66, %cst_27 [1] : vector<8x16xf32> to vector<8xf32>
    %70 = vector.shape_cast %69 : vector<8xf32> to vector<8x1xf32>
    %cst_28 = arith.constant 1.600000e+01 : f32
    %71 = vector.broadcast %cst_28 : f32 to vector<8x1xf32>
    %72 = arith.divf %70, %71 : vector<8x1xf32>
    %73 = vector.broadcast %72 : vector<8x1xf32> to vector<8x16xf32>
    %74 = arith.subf %66, %73 : vector<8x16xf32>
    %75 = arith.mulf %74, %74 : vector<8x16xf32>
    %cst_29 = arith.constant dense<0.000000e+00> : vector<8xf32>
    %76 = vector.multi_reduction <add>, %75, %cst_29 [1] : vector<8x16xf32> to vector<8xf32>
    %77 = vector.shape_cast %76 : vector<8xf32> to vector<8x1xf32>
    %cst_30 = arith.constant 1.600000e+01 : f32
    %78 = vector.broadcast %cst_30 : f32 to vector<8x1xf32>
    %79 = arith.divf %77, %78 : vector<8x1xf32>
    %80 = vector.broadcast %72 : vector<8x1xf32> to vector<8x16xf32>
    %81 = arith.subf %66, %80 : vector<8x16xf32>
    %cst_31 = arith.constant 9.99999974E-6 : f32
    %82 = vector.broadcast %cst_31 : f32 to vector<8x1xf32>
    %83 = arith.addf %79, %82 : vector<8x1xf32>
    %84 = math.rsqrt %83 : vector<8x1xf32>
    %85 = vector.broadcast %84 : vector<8x1xf32> to vector<8x16xf32>
    %86 = arith.mulf %81, %85 : vector<8x16xf32>
    %87 = vector.broadcast %67 : vector<1x16xf32> to vector<8x16xf32>
    %88 = arith.mulf %86, %87 : vector<8x16xf32>
    %89 = vector.broadcast %68 : vector<1x16xf32> to vector<8x16xf32>
    %90 = arith.addf %88, %89 : vector<8x16xf32>
    %91 = arith.truncf %90 : vector<8x16xf32> to vector<8x16xbf16>
    %c0_32 = arith.constant 0 : index
    %c0_33 = arith.constant 0 : index
    %92 = vector.load %arg8[%c0_32, %c0_33] : memref<16x64xbf16, #tpu.memory_space<vmem>>, vector<16x64xbf16>
    %cst_34 = arith.constant dense<0.000000e+00> : vector<8x64xf32>
    %93 = tpu.matmul %91, %92, %cst_34 {dimension_numbers = #tpu.dot_dimension_numbers<[1], [0], [0], [1], [0, 0, 1, 1], [], []>} : vector<8x16xbf16>, vector<16x64xbf16>, vector<8x64xf32> -> vector<8x64xf32>
    %c0_35 = arith.constant 0 : index
    %c0_36 = arith.constant 0 : index
    %94 = vector.load %arg9[%c0_35, %c0_36] : memref<1x64xf32, #tpu.memory_space<vmem>>, vector<1x64xf32>
    %95 = vector.broadcast %94 : vector<1x64xf32> to vector<8x64xf32>
    %96 = arith.addf %93, %95 : vector<8x64xf32>
    %cst_37 = arith.constant 0.000000e+00 : f32
    %97 = vector.broadcast %cst_37 : f32 to vector<8x64xf32>
    %98 = arith.maximumf %96, %97 : vector<8x64xf32>
    %99 = arith.truncf %98 : vector<8x64xf32> to vector<8x64xbf16>
    %c0_38 = arith.constant 0 : index
    %c0_39 = arith.constant 0 : index
    %100 = vector.load %arg10[%c0_38, %c0_39] : memref<64x16xbf16, #tpu.memory_space<vmem>>, vector<64x16xbf16>
    %cst_40 = arith.constant dense<0.000000e+00> : vector<8x16xf32>
    %101 = tpu.matmul %99, %100, %cst_40 {dimension_numbers = #tpu.dot_dimension_numbers<[1], [0], [0], [1], [0, 0, 1, 1], [], []>} : vector<8x64xbf16>, vector<64x16xbf16>, vector<8x16xf32> -> vector<8x16xf32>
    %c0_41 = arith.constant 0 : index
    %c0_42 = arith.constant 0 : index
    %102 = vector.load %arg11[%c0_41, %c0_42] : memref<1x16xf32, #tpu.memory_space<vmem>>, vector<1x16xf32>
    %103 = vector.broadcast %102 : vector<1x16xf32> to vector<8x16xf32>
    %104 = arith.addf %101, %103 : vector<8x16xf32>
    %105 = arith.addf %90, %104 : vector<8x16xf32>
    %c0_43 = arith.constant 0 : index
    %c0_44 = arith.constant 0 : index
    %106 = vector.load %arg12[%c0_43, %c0_44] : memref<1x16xf32, #tpu.memory_space<vmem>>, vector<1x16xf32>
    %c0_45 = arith.constant 0 : index
    %c0_46 = arith.constant 0 : index
    %107 = vector.load %arg13[%c0_45, %c0_46] : memref<1x16xf32, #tpu.memory_space<vmem>>, vector<1x16xf32>
    %cst_47 = arith.constant dense<0.000000e+00> : vector<8xf32>
    %108 = vector.multi_reduction <add>, %105, %cst_47 [1] : vector<8x16xf32> to vector<8xf32>
    %109 = vector.shape_cast %108 : vector<8xf32> to vector<8x1xf32>
    %cst_48 = arith.constant 1.600000e+01 : f32
    %110 = vector.broadcast %cst_48 : f32 to vector<8x1xf32>
    %111 = arith.divf %109, %110 : vector<8x1xf32>
    %112 = vector.broadcast %111 : vector<8x1xf32> to vector<8x16xf32>
    %113 = arith.subf %105, %112 : vector<8x16xf32>
    %114 = arith.mulf %113, %113 : vector<8x16xf32>
    %cst_49 = arith.constant dense<0.000000e+00> : vector<8xf32>
    %115 = vector.multi_reduction <add>, %114, %cst_49 [1] : vector<8x16xf32> to vector<8xf32>
    %116 = vector.shape_cast %115 : vector<8xf32> to vector<8x1xf32>
    %cst_50 = arith.constant 1.600000e+01 : f32
    %117 = vector.broadcast %cst_50 : f32 to vector<8x1xf32>
    %118 = arith.divf %116, %117 : vector<8x1xf32>
    %119 = vector.broadcast %111 : vector<8x1xf32> to vector<8x16xf32>
    %120 = arith.subf %105, %119 : vector<8x16xf32>
    %cst_51 = arith.constant 9.99999974E-6 : f32
    %121 = vector.broadcast %cst_51 : f32 to vector<8x1xf32>
    %122 = arith.addf %118, %121 : vector<8x1xf32>
    %123 = math.rsqrt %122 : vector<8x1xf32>
    %124 = vector.broadcast %123 : vector<8x1xf32> to vector<8x16xf32>
    %125 = arith.mulf %120, %124 : vector<8x16xf32>
    %126 = vector.broadcast %106 : vector<1x16xf32> to vector<8x16xf32>
    %127 = arith.mulf %125, %126 : vector<8x16xf32>
    %128 = vector.broadcast %107 : vector<1x16xf32> to vector<8x16xf32>
    %129 = arith.addf %127, %128 : vector<8x16xf32>
    %c0_52 = arith.constant 0 : index
    %c0_53 = arith.constant 0 : index
    %c0_54 = arith.constant 0 : index
    %130 = vector.load %arg14[%c0_52, %c0_53, %c0_54] : memref<1x8x16xf32, #tpu.memory_space<vmem>>, vector<1x8x16xf32>
    %131 = vector.shape_cast %130 : vector<1x8x16xf32> to vector<8x16xf32>
    %132 = vector.shape_cast %129 : vector<8x16xf32> to vector<1x8x16xf32>
    tpu.vector_store %arg14[%c0_52, %c0_53, %c0_54], %132 {strides = array<i32>} : memref<1x8x16xf32, #tpu.memory_space<vmem>>, vector<1x8x16xf32>,
    return
  }
  func.func @transform_0(%arg0: i32) -> (i32, i32, i32) {
    %c0_i32 = arith.constant 0 : i32
    %c0_i32_0 = arith.constant 0 : i32
    %c0_i32_1 = arith.constant 0 : i32
    return %arg0, %c0_i32, %c0_i32_0 : i32, i32, i32
  }
  func.func @transform_1(%arg0: i32) -> (i32, i32) {
    %c0_i32 = arith.constant 0 : i32
    %c0_i32_0 = arith.constant 0 : i32
    %c0_i32_1 = arith.constant 0 : i32
    return %c0_i32, %c0_i32_0 : i32, i32
  }
  func.func @transform_2(%arg0: i32) -> (i32, i32) {
    %c0_i32 = arith.constant 0 : i32
    %c0_i32_0 = arith.constant 0 : i32
    %c0_i32_1 = arith.constant 0 : i32
    return %c0_i32, %c0_i32_0 : i32, i32
  }
  func.func @transform_3(%arg0: i32) -> (i32, i32) {
    %c0_i32 = arith.constant 0 : i32
    %c0_i32_0 = arith.constant 0 : i32
    %c0_i32_1 = arith.constant 0 : i32
    return %c0_i32, %c0_i32_0 : i32, i32
  }
  func.func @transform_4(%arg0: i32) -> (i32, i32) {
    %c0_i32 = arith.constant 0 : i32
    %c0_i32_0 = arith.constant 0 : i32
    %c0_i32_1 = arith.constant 0 : i32
    return %c0_i32, %c0_i32_0 : i32, i32
  }
  func.func @transform_5(%arg0: i32) -> (i32, i32) {
    %c0_i32 = arith.constant 0 : i32
    %c0_i32_0 = arith.constant 0 : i32
    %c0_i32_1 = arith.constant 0 : i32
    return %c0_i32, %c0_i32_0 : i32, i32
  }
  func.func @transform_6(%arg0: i32) -> (i32, i32) {
    %c0_i32 = arith.constant 0 : i32
    %c0_i32_0 = arith.constant 0 : i32
    %c0_i32_1 = arith.constant 0 : i32
    return %c0_i32, %c0_i32_0 : i32, i32
  }
  func.func @transform_7(%arg0: i32) -> (i32, i32) {
    %c0_i32 = arith.constant 0 : i32
    %c0_i32_0 = arith.constant 0 : i32
    %c0_i32_1 = arith.constant 0 : i32
    return %c0_i32, %c0_i32_0 : i32, i32
  }
  func.func @transform_8(%arg0: i32) -> (i32, i32) {
    %c0_i32 = arith.constant 0 : i32
    %c0_i32_0 = arith.constant 0 : i32
    %c0_i32_1 = arith.constant 0 : i32
    return %c0_i32, %c0_i32_0 : i32, i32
  }
  func.func @transform_9(%arg0: i32) -> (i32, i32) {
    %c0_i32 = arith.constant 0 : i32
    %c0_i32_0 = arith.constant 0 : i32
    %c0_i32_1 = arith.constant 0 : i32
    return %c0_i32, %c0_i32_0 : i32, i32
  }
  func.func @transform_10(%arg0: i32) -> (i32, i32) {
    %c0_i32 = arith.constant 0 : i32
    %c0_i32_0 = arith.constant 0 : i32
    %c0_i32_1 = arith.constant 0 : i32
    return %c0_i32, %c0_i32_0 : i32, i32
  }
  func.func @transform_11(%arg0: i32) -> (i32, i32) {
    %c0_i32 = arith.constant 0 : i32
    %c0_i32_0 = arith.constant 0 : i32
    %c0_i32_1 = arith.constant 0 : i32
    return %c0_i32, %c0_i32_0 : i32, i32
  }
  func.func @transform_12(%arg0: i32) -> (i32, i32) {
    %c0_i32 = arith.constant 0 : i32
    %c0_i32_0 = arith.constant 0 : i32
    %c0_i32_1 = arith.constant 0 : i32
    return %c0_i32, %c0_i32_0 : i32, i32
  }
  func.func @transform_13(%arg0: i32) -> (i32, i32, i32) {
    %c0_i32 = arith.constant 0 : i32
    %c0_i32_0 = arith.constant 0 : i32
    %c0_i32_1 = arith.constant 0 : i32
    return %arg0, %c0_i32, %c0_i32_0 : i32, i32, i32
  }
}

</mosaic_0001>

<bundles_post_ra>
// kernel: transformer_encoder_part_seq.6
= control target key start
LH: loop header
LB: loop body
LE: loop exit
PB: predicated region body
PF: predicated region fallthrough
CT: control target
= control target key end

     0   :  { %s1316_s25 = smov 0   ;;  %s1446_s0 = inlined_call_operand.vmem [shape: f32[2,8,16], index: 0, kind: input, shape index: {}]   ;;  %s1447_s1 = inlined_call_operand.vmem [shape: bf16[16,48], index: 1, kind: input, shape index: {}]   ;;  %s1448_s2 = inlined_call_operand.vmem [shape: f32[1,48], index: 2, kind: input, shape index: {}]   ;;  %s1449_s3 = inlined_call_operand.vmem [shape: bf16[16,16], index: 3, kind: input, shape index: {}]   ;;  %s1450_s4 = inlined_call_operand.vmem [shape: f32[1,16], index: 4, kind: input, shape index: {}]   ;;  %s1451_s5 = inlined_call_operand.vmem [shape: f32[1,16], index: 5, kind: input, shape index: {}]   ;;  %s1452_s6 = inlined_call_operand.vmem [shape: f32[1,16], index: 6, kind: input, shape index: {}]   ;;  %s1453_s7 = inlined_call_operand.vmem [shape: bf16[16,64], index: 7, kind: input, shape index: {}]   ;;  %s1454_s8 = inlined_call_operand.vmem [shape: f32[1,64], index: 8, kind: input, shape index: {}]   ;;  %s1455_s9 = inlined_call_operand.vmem [shape: bf16[64,16], index: 9, kind: input, shape index: {}]   ;;  %s1456_s10 = inlined_call_operand.vmem [shape: f32[1,16], index: 10, kind: input, shape index: {}]   ;;  %s1457_s11 = inlined_call_operand.vmem [shape: f32[1,16], index: 11, kind: input, shape index: {}]   ;;  %s1458_s12 = inlined_call_operand.vmem [shape: f32[1,16], index: 12, kind: input, shape index: {}]   ;;  %s1459_s13 = inlined_call_operand.vmem [shape: f32[2,8,16], index: 13, kind: output, shape index: {}]  }
   0x1 LB: > { %s1085_s26 = sadd.s32 4294967295, %s1237_s25   ;;  %p1089_p0 = scmp.ge.s32.totalorder %s1237_s25, 1  ;;  %s1237_s25 = sphi %s1316_s25, %s23_s25  }
   0x2   : > { %p386_p1 = scmp.lt.s32.totalorder %s1237_s25, 3 }
   0x4   : > { %p387_p2 = pnand %p1089_p0, %p386_p1 }
   0x5   : > { %v1213_v0 = vld [vmem:[%s1447_s1] sm:$0xff] (!%p387_p2)   ;;  %v1239_v1 = vmov (!%p387_p2), 0.0   ;;  %p428_p3 = scmp.lt.s32.totalorder (!%p387_p2), %s1085_s26, 1  ;;  %vm1240_vm0 = vmmov (!%p387_p2), 0   ;;  %vm454_vm1 = vcmask (!%p387_p2), 130048   ;;  %s1241_s18 = smov (!%p387_p2), 120  }
   0x6   : > { %390 = sbr.rel (%p387_p2) target bundleno = 2391 (0x957), region = 72  ;;  %1138 = vmatprep.subr.bf16.mxu1 (!%p387_p2), %v1239_v1  ;;  %1150 = vmatprep.subr.bf16.mxu0 (!%p387_p2), %v1239_v1  ;;  %v1092_v4 = vld [vmem:[%s1448_s2] ss:$0 sm:$0xff] (!%p387_p2)  ;;  %s1242_s19 = smov (!%p387_p2), 112   ;;  %vm504_vm2 = vcmask (!%p387_p2), 64512   ;;  %vm569_vm3 = vcmask (!%p387_p2), 1043456  }
   0x7   : > { %1139 = vmatpush3.bf16.msra.mxu1 (!%p387_p2), %v1213_v0  ;;  %1140 = vmatprep.mubr.msk.bf16.mxu1 (!%p387_p2), %vm1240_vm0, %v1239_v1  ;;  %s1243_s20 = smov (!%p387_p2), 104   ;;  %s1244_s21 = smov (!%p387_p2), 96   ;;  %v498_v50 = vld [vmem:[%s1449_s3] sm:$0xf] (!%p387_p2)  ;;  %v499_v52 = vld [vmem:[%s1449_s3 + $0x4] sm:$0xf] (!%p387_p2) }
   0x8   : > { %1144 = vmatprep.subr.bf16.mxu1 (!%p387_p2), %v1239_v1  ;;  %1152 = vmatprep.mubr.msk.bf16.mxu0 (!%p387_p2), %vm1240_vm0, %v1239_v1  ;;  %s1245_s22 = smov (!%p387_p2), 88   ;;  %v776_v51 = vsel (!%p387_p2), %vm569_vm3, %v498_v50, 0  ;;  %v730_v53 = vsel (!%p387_p2), %vm569_vm3, %v499_v52, 0  ;;  %vm957_vm4 = vcmask (!%p387_p2), 523264  }
   0xd   : > { %s1461_s26 = smov (!%p428_p3, %s1085_s26), 1 }
   0xe   : > { %s1090_s29 = sshll.u32 %s1461_s26, 3 }
   0xf   : > { %s431_s15 = scalar_lea.vmem %s1446_s0, %s1090_s29  ;;  %s435_s27 = scalar_lea.vmem %s1459_s13, %s1090_s29 }
  0x10   : > { %v1342_v2 = vld [vmem:[%s431_s15] sm:$0xff] }
  0x11   : > { %v438_v3 = vpack.c.bf16 %v1342_v2, %v1342_v2 }
  0x13   : > { %1141 = vmatmul.mubr.msk.bf16.vlgmr.msra.gmra.mrb[0].mxu1 %vm454_vm1, %v438_v3 }
  0x14   : > { %1146 = vmatprep.mubr.msk.bf16.mxu1 %vm1240_vm0, %v1239_v1 }
  0xe6   : > { %v492_v5 = vpop.f32.mrb[0].mxu1 }
  0xe7   : > { %v493_v6 = vadd.f32 %v1092_v4, %v492_v5  ;;  %v1142_v7 = vpop.f32.mrb[1].mxu1 }
  0xe8   : > { %v495_v8 = vpop.f32.mrb[2].mxu1  ;;  %v1101_v7 = vld [vmem:[%s1450_s4] ss:$0 sm:$0xff] }
  0xe9   : > { %v500_v9 = vpack.c.bf16 %v493_v6, %v493_v6  ;;  %v1143_v10 = vpop.f32.mrb[3].mxu1 }
  0xeb   : > { %614 = vrot.lane.b32.xlu1 %v500_v9, %s1241_s18  ;;  %502 = vrot.lane.b32.xlu0 %v500_v9, %s1242_s19 }
  0xef   : > { %616 = vrot.lane.b32.xlu0 %v500_v9, %s1243_s20 }
 0x15d   : > { %v503_v11 = vpop.permute.xlu0 %502  ;;  %v615_v15 = vpop.permute.xlu1 %614 }
 0x15e   : > { %v509_v12 = vsel %vm504_vm2, %v503_v11, 0 }
 0x15f   : > { %1145 = vmatpush3.bf16.xpose.msra.mxu1 %v509_v12 }
 0x160   : > { %1156 = vmatprep.subr.bf16.mxu1 %v1239_v1 }
 0x161   : > { %v617_v13 = vpop.permute.xlu0 %616 }
 0x162   : > { %v622_v14 = vsel %vm504_vm2, %v617_v13, 0 }
 0x166   : > { %1147 = vmatmul.mubr.msk.bf16.vlgmr.msra.gmra.mrb[4].mxu1 %vm504_vm2, %v500_v9 }
 0x167   : > { %1157 = vmatpush3.bf16.xpose.msra.mxu1 %v622_v14  ;;  %1158 = vmatprep.mubr.msk.bf16.mxu1 %vm1240_vm0, %v1239_v1 }
 0x168   : > { %1168 = vmatprep.subr.bf16.mxu1 %v1239_v1 }
 0x16e   : > { %1159 = vmatmul.mubr.msk.bf16.vlgmr.msra.gmra.mrb[8].mxu1 %vm504_vm2, %v615_v15 }
 0x16f   : > { %1170 = vmatprep.mubr.msk.bf16.mxu1 %vm1240_vm0, %v1239_v1  ;;  %1169 = vmatpush3.bf16.msra.mxu1 %v730_v53 }
 0x170   : > { %1180 = vmatprep.subr.bf16.mxu1 %v1239_v1 }
 0x239   : > { %v545_v16 = vpop.f32.mrb[4].mxu1 }
 0x23a   : > { %v551_v17 = vmul.f32 0.35355338, %v545_v16  ;;  %v1148_v18 = vpop.f32.mrb[5].mxu1 }
 0x23b   : > { %v548_v19 = vpop.f32.mrb[6].mxu1 }
 0x23c   : > { %v1149_v20 = vpop.f32.mrb[7].mxu1  ;;  %v552_v21 = vsel %vm504_vm2, %v551_v17, -inf }
 0x23d   : > { %553 = vmax.xlane.f32.xlu1 %v552_v21  ;;  %v1214_v20 = vld [vmem:[%s1453_s7] sm:$0xff]  }
 0x23e   : > { %v1215_v21 = vld [vmem:[%s1455_s9] sm:$0xff]  }
 0x241   : > { %v658_v22 = vpop.f32.mrb[8].mxu1 }
 0x242   : > { %v664_v23 = vmul.f32 0.35355338, %v658_v22  ;;  %v1160_v24 = vpop.f32.mrb[9].mxu1 }
 0x243   : > { %v661_v25 = vpop.f32.mrb[10].mxu1 }
 0x244   : > { %v1161_v26 = vpop.f32.mrb[11].mxu1  ;;  %v665_v27 = vsel %vm504_vm2, %v664_v23, -inf }
 0x245   : > { %666 = vmax.xlane.f32.xlu0 %v665_v27  ;;  %v1102_v26 = vld [vmem:[%s1451_s5] ss:$0 sm:$0xff] }
 0x2ca   : > { %v554_v28 = vpop.xlane.xlu1 %553 }
 0x2cb   : > { %v555_v29 = vsub.f32 %v551_v17, %v554_v28  ;;  %v1103_v28 = vld [vmem:[%s1452_s6] ss:$0 sm:$0xff] }
 0x2cd   : > { %v556_v30 = vmul.f32 1.442695, %v555_v29 }
 0x2cf   : > { %1219 = vpow2.f32 %v556_v30 }
 0x2d2   : > { %v667_v31 = vpop.xlane.xlu0 %666 }
 0x2d3   : > { %v668_v32 = vsub.f32 %v664_v23, %v667_v31 }
 0x2d5   : > { %v669_v33 = vmul.f32 1.442695, %v668_v32  ;;  %v1217_v32 = vld [vmem:[%s1455_s9 + $0x10] sm:$0xff]  }
 0x2d7   : > { %1221 = vpow2.f32 %v669_v33  ;;  %v1218_v33 = vld [vmem:[%s1455_s9 + $0x18] sm:$0xff]  }
 0x2d9   : > { %v1220_v34 = vpop.eup %1219 }
 0x2da   : > { %v558_v35 = vsel %vm504_vm2, %v1220_v34, 0.0 }
 0x2db   : > { %559 = vadd.xlane.f32.xlu0 %v558_v35 }
 0x2e1   : > { %v1222_v36 = vpop.eup %1221 }
 0x2e2   : > { %v671_v37 = vsel %vm504_vm2, %v1222_v36, 0.0 }
 0x2e3   : > { %672 = vadd.xlane.f32.xlu1 %v671_v37 }
 0x2f1   : > { %564 = vrot.lane.b32.xlu0 %v500_v9, %s1244_s21 }
 0x2f4   : > { %677 = vrot.lane.b32.xlu1 %v500_v9, %s1245_s22 }
 0x368   : > { %v560_v38 = vpop.xlane.xlu0 %559 }
 0x369   : > { %1223 = vrcp.f32 %v560_v38 }
 0x36c   : > { %v565_v39 = vpop.permute.xlu0 %564 }
 0x36d   : > { %v571_v40 = vsel %vm569_vm3, %v565_v39, 0 }
 0x36e   : > { %1151 = vmatpush3.bf16.msra.mxu0 %v571_v40 }
 0x36f   : > { %1162 = vmatprep.subr.bf16.mxu0 %v1239_v1 }
 0x370   : > { %v673_v41 = vpop.xlane.xlu1 %672 }
 0x371   : > { %1225 = vrcp.f32 %v673_v41 }
 0x373   : > { %v1224_v42 = vpop.eup %1223 }
 0x374   : > { %v562_v43 = vmul.f32 %v1224_v42, %v1220_v34  ;;  %v678_v44 = vpop.permute.xlu1 %677  ;;  %v1104_v34 = vld [vmem:[%s1454_s8] ss:$0 sm:$0xff] }
 0x375   : > { %v683_v46 = vsel %vm569_vm3, %v678_v44, 0 }
 0x376   : > { %v563_v45 = vpack.c.bf16 %v562_v43, %v562_v43 }
 0x378   : > { %1153 = vmatmul.mubr.msk.bf16.vlgmr.msra.gmra.mrb[0].mxu0 %vm504_vm2, %v563_v45 }
 0x379   : > { %1163 = vmatpush3.bf16.msra.mxu0 %v683_v46  ;;  %1164 = vmatprep.mubr.msk.bf16.mxu0 %vm1240_vm0, %v1239_v1 }
 0x37a   : > { %1174 = vmatprep.subr.bf16.mxu0 %v1239_v1 }
 0x37b   : > { %v1226_v47 = vpop.eup %1225 }
 0x37c   : > { %v675_v48 = vmul.f32 %v1226_v47, %v1222_v36 }
 0x37e   : > { %v676_v49 = vpack.c.bf16 %v675_v48, %v675_v48 }
 0x380   : > { %1165 = vmatmul.mubr.msk.bf16.vlgmr.msra.gmra.mrb[4].mxu0 %vm504_vm2, %v676_v49 }
 0x381   : > { %1176 = vmatprep.mubr.msk.bf16.mxu0 %vm1240_vm0, %v1239_v1  ;;  %1175 = vmatpush3.bf16.msra.mxu0 %v776_v51 }
 0x382   : > { %1186 = vmatprep.subr.bf16.mxu0 %v1239_v1 }
 0x44b   : > { %v607_v54 = vpop.f32.mrb[0].mxu0 }
 0x44c   : > { %v613_v55 = vpack.c.bf16 %v607_v54, %v607_v54  ;;  %v1154_v56 = vpop.f32.mrb[1].mxu0 }
 0x44d   : > { %v610_v57 = vpop.f32.mrb[2].mxu0 }
 0x44e   : > { %v1155_v58 = vpop.f32.mrb[3].mxu0  ;;  %1177 = vmatmul.mubr.msk.bf16.vlgmr.msra.gmra.mrb[8].mxu0 %vm504_vm2, %v613_v55 }
 0x44f   : > { %1194 = vmatprep.mubr.msk.bf16.mxu0 %vm1240_vm0, %v1239_v1  ;;  %1187 = vmatpush3.bf16.msra.mxu0 %v1215_v21  ;;  %v1113_v58 = vld [vmem:[%s1457_s11] ss:$0 sm:$0xff] }
 0x450   : > { %1188 = vmatprep.subr.bf16.mxu0 %v1239_v1 }
 0x453   : > { %v719_v59 = vpop.f32.mrb[4].mxu0 }
 0x454   : > { %v725_v60 = vpack.c.bf16 %v719_v59, %v719_v59  ;;  %v1166_v61 = vpop.f32.mrb[5].mxu0 }
 0x455   : > { %v722_v62 = vpop.f32.mrb[6].mxu0 }
 0x456   : > { %v1167_v63 = vpop.f32.mrb[7].mxu0  ;;  %1171 = vmatmul.mubr.msk.bf16.vlgmr.msra.gmra.mrb[12].mxu1 %vm504_vm2, %v725_v60  ;;  %v1114_v60 = vld [vmem:[%s1458_s12] ss:$0 sm:$0xff] }
 0x457   : > { %1182 = vmatprep.mubr.msk.bf16.mxu1 %vm1240_vm0, %v1239_v1  ;;  %1181 = vmatpush3.bf16.msra.mxu1 %v1214_v20 }
 0x521   : > { %v812_v0 = vpop.f32.mrb[8].mxu0 }
 0x522   : > { %v1178_v3 = vpop.f32.mrb[9].mxu0 }
 0x523   : > { %v815_v4 = vpop.f32.mrb[10].mxu0 }
 0x524   : > { %v1179_v5 = vpop.f32.mrb[11].mxu0 }
 0x529   : > { %v766_v6 = vpop.f32.mrb[12].mxu1 }
 0x52a   : > { %v813_v8 = vadd.f32 %v812_v0, %v766_v6  ;;  %v1172_v9 = vpop.f32.mrb[13].mxu1 }
 0x52b   : > { %v769_v10 = vpop.f32.mrb[14].mxu1 }
 0x52c   : > { %v825_v11 = vadd.f32 %v1101_v7, %v813_v8  ;;  %v1173_v12 = vpop.f32.mrb[15].mxu1 }
 0x52e   : > { %v826_v13 = vadd.f32 %v825_v11, %v1342_v2  ;;  %v1216_v2 = vld [vmem:[%s1455_s9 + $0x8] sm:$0xff]  }
 0x52f   : > { %1189 = vmatpush3.bf16.msra.mxu0 %v1216_v2 }
 0x530   : > { %v829_v14 = vsel %vm454_vm1, %v826_v13, 0.0  ;;  %1190 = vmatprep.subr.bf16.mxu0 %v1239_v1 }
 0x531   : > { %830 = vadd.xlane.f32.xlu1 %v829_v14 }
 0x533   : > { %1191 = vmatpush3.bf16.msra.mxu0 %v1217_v32 }
 0x534   : > { %1192 = vmatprep.subr.bf16.mxu0 %v1239_v1  ;;  %v1107_v1 = vld [vmem:[%s1456_s10] ss:$0 sm:$0xff] }
 0x537   : > { %1193 = vmatpush3.bf16.msra.mxu0 %v1218_v33 }
 0x5be   : > { %v831_v15 = vpop.xlane.xlu1 %830 }
 0x5bf   : > { %v833_v16 = vmul.f32 0.0625, %v831_v15 }
 0x5c1   : > { %v834_v17 = vsub.f32 %v826_v13, %v833_v16 }
 0x5c3   : > { %v835_v18 = vmul.f32 %v834_v17, %v834_v17 }
 0x5c5   : > { %v836_v19 = vsel %vm454_vm1, %v835_v18, 0.0 }
 0x5c6   : > { %837 = vadd.xlane.f32.xlu0 %v836_v19 }
 0x653   : > { %v838_v22 = vpop.xlane.xlu0 %837 }
 0x654   : > { %v839_v23 = vmul.f32 0.0625, %v838_v22 }
 0x656   : > { %v840_v24 = vadd.f32 1e-05, %v839_v23 }
 0x658   : > { %1227 = vrsqrt.f32 %v840_v24 }
 0x662   : > { %v1228_v25 = vpop.eup %1227 }
 0x663   : > { %v842_v27 = vmul.f32 %v1228_v25, %v834_v17 }
 0x665   : > { %v849_v29 = vmul.f32 %v1102_v26, %v842_v27 }
 0x667   : > { %v856_v30 = vadd.f32 %v1103_v28, %v849_v29 }
 0x669   : > { %v857_v31 = vpack.c.bf16 %v856_v30, %v856_v30 }
 0x66b   : > { %1183 = vmatmul.mubr.msk.bf16.vlgmr.msra.gmra.mrb[16].mxu1 %vm454_vm1, %v857_v31 }
 0x73e   : > { %v910_v35 = vpop.f32.mrb[16].mxu1 }
 0x73f   : > { %v911_v36 = vadd.f32 %v1104_v34, %v910_v35  ;;  %v1184_v37 = vpop.f32.mrb[17].mxu1 }
 0x740   : > { %v913_v38 = vpop.f32.mrb[18].mxu1 }
 0x741   : > { %v916_v39 = vmax.f32 %v911_v36, 0.0  ;;  %v1185_v40 = vpop.f32.mrb[19].mxu1 }
 0x743   : > { %v917_v41 = vpack.c.bf16 %v916_v39, %v916_v39 }
 0x745   : > { %1195 = vmatmul.mubr.msk.bf16.vlgmr.msra.gmra.mrb[12].mxu0 %vm957_vm4, %v917_v41 }
 0x818   : > { %v995_v42 = vpop.f32.mrb[12].mxu0 }
 0x819   : > { %v996_v43 = vadd.f32 %v1107_v1, %v995_v42  ;;  %v1196_v44 = vpop.f32.mrb[13].mxu0 }
 0x81a   : > { %v998_v45 = vpop.f32.mrb[14].mxu0 }
 0x81b   : > { %v1197_v46 = vpop.f32.mrb[15].mxu0  ;;  %v1001_v47 = vadd.f32 %v996_v43, %v856_v30 }
 0x81d   : > { %v1004_v48 = vsel %vm454_vm1, %v1001_v47, 0.0 }
 0x81e   : > { %1005 = vadd.xlane.f32.xlu0 %v1004_v48 }
 0x8ab   : > { %v1006_v49 = vpop.xlane.xlu0 %1005 }
 0x8ac   : > { %v1007_v50 = vmul.f32 0.0625, %v1006_v49 }
 0x8ae   : > { %v1008_v51 = vsub.f32 %v1001_v47, %v1007_v50 }
 0x8b0   : > { %v1009_v52 = vmul.f32 %v1008_v51, %v1008_v51 }
 0x8b2   : > { %v1010_v53 = vsel %vm454_vm1, %v1009_v52, 0.0 }
 0x8b3   : > { %1011 = vadd.xlane.f32.xlu1 %v1010_v53 }
 0x940   : > { %v1012_v54 = vpop.xlane.xlu1 %1011 }
 0x941   : > { %v1013_v55 = vmul.f32 0.0625, %v1012_v54 }
 0x943   : > { %v1014_v56 = vadd.f32 1e-05, %v1013_v55 }
 0x945   : > { %1229 = vrsqrt.f32 %v1014_v56 }
 0x94f   : > { %v1230_v57 = vpop.eup %1229 }
 0x950   : > { %v1016_v59 = vmul.f32 %v1230_v57, %v1008_v51 }
 0x952   : > { %v1023_v61 = vmul.f32 %v1113_v58, %v1016_v59 }
 0x954   : > { %v1030_v62 = vadd.f32 %v1114_v60, %v1023_v61 }
 0x956   : > { %1031 = vst.msk [vmem:[%s435_s27] sm:$0xff] %vm454_vm1, %v1030_v62 }
 0x957 PF: > { %s23_s25 = sadd.s32 1, %s1237_s25  }
 0x958   : > { %p20_p4 = scmp.ge.s32.totalorder %s23_s25, 4  }
 0x95a   :  { %22 = sbr.rel (!%p20_p4) target bundleno = 1 (0x1), region = 102 }

// kernel: transformer_encoder_part_seq.4
= control target key start
LH: loop header
LB: loop body
LE: loop exit
PB: predicated region body
PF: predicated region fallthrough
CT: control target
= control target key end

     0   :  { %s1736_s25 = smov 0   ;;  %s1931_s0 = inlined_call_operand.vmem [shape: f32[2,8,32], index: 0, kind: input, shape index: {}]   ;;  %s1932_s1 = inlined_call_operand.vmem [shape: bf16[32,96], index: 1, kind: input, shape index: {}]   ;;  %s1933_s2 = inlined_call_operand.vmem [shape: f32[1,96], index: 2, kind: input, shape index: {}]   ;;  %s1934_s3 = inlined_call_operand.vmem [shape: bf16[32,32], index: 3, kind: input, shape index: {}]   ;;  %s1935_s4 = inlined_call_operand.vmem [shape: f32[1,32], index: 4, kind: input, shape index: {}]   ;;  %s1936_s5 = inlined_call_operand.vmem [shape: f32[1,32], index: 5, kind: input, shape index: {}]   ;;  %s1937_s6 = inlined_call_operand.vmem [shape: f32[1,32], index: 6, kind: input, shape index: {}]   ;;  %s1938_s7 = inlined_call_operand.vmem [shape: bf16[32,64], index: 7, kind: input, shape index: {}]   ;;  %s1939_s8 = inlined_call_operand.vmem [shape: f32[1,64], index: 8, kind: input, shape index: {}]   ;;  %s1940_s9 = inlined_call_operand.vmem [shape: bf16[64,32], index: 9, kind: input, shape index: {}]   ;;  %s1941_s10 = inlined_call_operand.vmem [shape: f32[1,32], index: 10, kind: input, shape index: {}]   ;;  %s1942_s11 = inlined_call_operand.vmem [shape: f32[1,32], index: 11, kind: input, shape index: {}]   ;;  %s1943_s12 = inlined_call_operand.vmem [shape: f32[1,32], index: 12, kind: input, shape index: {}]   ;;  %s1944_s13 = inlined_call_operand.vmem [shape: f32[2,8,32], index: 13, kind: output, shape index: {}]  }
   0x1 LB: > { %s1421_s26 = sadd.s32 4294967295, %s1651_s25   ;;  %p1425_p0 = scmp.ge.s32.totalorder %s1651_s25, 1  ;;  %s1651_s25 = sphi %s1736_s25, %s23_s25  }
   0x2   : > { %p386_p1 = scmp.lt.s32.totalorder %s1651_s25, 3 }
   0x4   : > { %p387_p2 = pnand %p1425_p0, %p386_p1 }
   0x5   : > { %v1617_v0 = vld [vmem:[%s1932_s1] sm:$0xff] (!%p387_p2)   ;;  %v1653_v1 = vmov (!%p387_p2), 0.0   ;;  %v1618_v2 = vld [vmem:[%s1932_s1 + $0x8] sm:$0xff] (!%p387_p2)   ;;  %vm1654_vm0 = vmmov (!%p387_p2), 0   ;;  %p428_p3 = scmp.lt.s32.totalorder (!%p387_p2), %s1421_s26, 1  ;;  %vm462_vm1 = vcmask (!%p387_p2), 261120  }
   0x6   : > { %390 = sbr.rel (%p387_p2) target bundleno = 3681 (0xe61), region = 72  ;;  %1496 = vmatprep.subr.bf16.mxu1 (!%p387_p2), %v1653_v1  ;;  %1510 = vmatprep.subr.bf16.mxu0 (!%p387_p2), %v1653_v1  ;;  %v1428_v5 = vld [vmem:[%s1933_s2] ss:$0 sm:$0xff] (!%p387_p2)  ;;  %s1655_s20 = smov (!%p387_p2), 120   ;;  %vm514_vm2 = vcmask (!%p387_p2), 64512   ;;  %vm579_vm3 = vcmask (!%p387_p2), 1043456  }
   0x7   : > { %1497 = vmatpush3.bf16.msra.mxu1 (!%p387_p2), %v1617_v0  ;;  %1500 = vmatprep.mubr.msk.bf16.mxu1 (!%p387_p2), %vm1654_vm0, %v1653_v1  ;;  %s1656_s21 = smov (!%p387_p2), 96   ;;  %s1657_s22 = smov (!%p387_p2), 88   ;;  %v506_v51 = vld [vmem:[%s1934_s3] sm:$0xf] (!%p387_p2)  ;;  %v507_v53 = vld [vmem:[%s1934_s3 + $0x4] sm:$0xf] (!%p387_p2) }
   0x8   : > { %1498 = vmatprep.subr.bf16.mxu1 (!%p387_p2), %v1653_v1  ;;  %1512 = vmatprep.mubr.msk.bf16.mxu0 (!%p387_p2), %vm1654_vm0, %v1653_v1  ;;  %s1658_s23 = smov (!%p387_p2), 64   ;;  %s1659_s24 = smov (!%p387_p2), 56   ;;  %v786_v52 = vsel (!%p387_p2), %vm579_vm3, %v506_v51, 0  ;;  %v740_v54 = vsel (!%p387_p2), %vm579_vm3, %v507_v53, 0  ;;  %vm1293_vm4 = vcmask (!%p387_p2), 523264  }
   0x9   : > { %s1660_s27 = smov (!%p387_p2), 112   ;;  %s1661_s28 = smov (!%p387_p2), 80  }
   0xa   : > { %s1663_s18 = smov (!%p387_p2), 104   ;;  %s1664_s19 = smov (!%p387_p2), 48  }
   0xb   : > { %1499 = vmatpush3.bf16.msra.mxu1 (!%p387_p2), %v1618_v2 }
   0xc   : > { %1504 = vmatprep.subr.bf16.mxu1 (!%p387_p2), %v1653_v1 }
   0xd   : > { %s1946_s26 = smov (!%p428_p3, %s1421_s26), 1 }
   0xe   : > { %s1426_s14 = sshll.u32 %s1946_s26, 3 }
   0xf   : > { %s431_s17 = scalar_lea.vmem %s1931_s0, %s1426_s14 }
  0x10   : > { %v1766_v3 = vld [vmem:[%s431_s17] sm:$0xff]  ;;  %s1662_s17 = smov 72  }
  0x11   : > { %v438_v4 = vpack.c.bf16 %v1766_v3, %v1766_v3 }
  0x13   : > { %1501 = vmatmul.mubr.msk.bf16.vlgmr.msra.gmra.mrb[0].mxu1 %vm462_vm1, %v438_v4 }
  0x14   : > { %1506 = vmatprep.mubr.msk.bf16.mxu1 %vm1654_vm0, %v1653_v1 }
  0xe6   : > { %v500_v6 = vpop.f32.mrb[0].mxu1 }
  0xe7   : > { %v501_v7 = vadd.f32 %v1428_v5, %v500_v6  ;;  %v1502_v8 = vpop.f32.mrb[1].mxu1 }
  0xe8   : > { %v503_v9 = vpop.f32.mrb[2].mxu1 }
  0xe9   : > { %v1776_v10 = vpack.c.bf16 %v501_v7, %v501_v7  ;;  %v1503_v11 = vpop.f32.mrb[3].mxu1 }
  0xeb   : > { %624 = vrot.lane.b32.xlu1 %v1776_v10, %s1655_s20  ;;  %512 = vrot.lane.b32.xlu0 %v1776_v10, %s1656_s21 }
  0xef   : > { %626 = vrot.lane.b32.xlu0 %v1776_v10, %s1657_s22  ;;  %s1665_s22 = smov 40  }
 0x15d   : > { %v513_v12 = vpop.permute.xlu0 %512  ;;  %v625_v16 = vpop.permute.xlu1 %624 }
 0x15e   : > { %v519_v13 = vsel %vm514_vm2, %v513_v12, 0 }
 0x15f   : > { %1505 = vmatpush3.bf16.xpose.msra.mxu1 %v519_v13 }
 0x160   : > { %1516 = vmatprep.subr.bf16.mxu1 %v1653_v1 }
 0x161   : > { %v627_v14 = vpop.permute.xlu0 %626 }
 0x162   : > { %v632_v15 = vsel %vm514_vm2, %v627_v14, 0 }
 0x166   : > { %1507 = vmatmul.mubr.msk.bf16.vlgmr.msra.gmra.mrb[4].mxu1 %vm514_vm2, %v1776_v10 }
 0x167   : > { %1517 = vmatpush3.bf16.xpose.msra.mxu1 %v632_v15  ;;  %1518 = vmatprep.mubr.msk.bf16.mxu1 %vm1654_vm0, %v1653_v1 }
 0x168   : > { %1528 = vmatprep.subr.bf16.mxu1 %v1653_v1 }
 0x16e   : > { %1519 = vmatmul.mubr.msk.bf16.vlgmr.msra.gmra.mrb[8].mxu1 %vm514_vm2, %v625_v16 }
 0x16f   : > { %1530 = vmatprep.mubr.msk.bf16.mxu1 %vm1654_vm0, %v1653_v1  ;;  %1529 = vmatpush3.bf16.msra.mxu1 %v740_v54 }
 0x170   : > { %1540 = vmatprep.subr.bf16.mxu1 %v1653_v1 }
 0x239   : > { %v555_v17 = vpop.f32.mrb[4].mxu1 }
 0x23a   : > { %v561_v18 = vmul.f32 0.35355338, %v555_v17  ;;  %v1508_v19 = vpop.f32.mrb[5].mxu1 }
 0x23b   : > { %v558_v20 = vpop.f32.mrb[6].mxu1 }
 0x23c   : > { %v1509_v21 = vpop.f32.mrb[7].mxu1  ;;  %v562_v22 = vsel %vm514_vm2, %v561_v18, -inf }
 0x23d   : > { %563 = vmax.xlane.f32.xlu1 %v562_v22 }
 0x241   : > { %v668_v23 = vpop.f32.mrb[8].mxu1 }
 0x242   : > { %v674_v24 = vmul.f32 0.35355338, %v668_v23  ;;  %v1520_v25 = vpop.f32.mrb[9].mxu1 }
 0x243   : > { %v671_v26 = vpop.f32.mrb[10].mxu1 }
 0x244   : > { %v1521_v27 = vpop.f32.mrb[11].mxu1  ;;  %v675_v28 = vsel %vm514_vm2, %v674_v24, -inf }
 0x245   : > { %676 = vmax.xlane.f32.xlu0 %v675_v28 }
 0x2ca   : > { %v564_v29 = vpop.xlane.xlu1 %563 }
 0x2cb   : > { %v565_v30 = vsub.f32 %v561_v18, %v564_v29 }
 0x2cd   : > { %v566_v31 = vmul.f32 1.442695, %v565_v30 }
 0x2cf   : > { %1625 = vpow2.f32 %v566_v31 }
 0x2d2   : > { %v677_v32 = vpop.xlane.xlu0 %676 }
 0x2d3   : > { %v678_v33 = vsub.f32 %v674_v24, %v677_v32 }
 0x2d5   : > { %v679_v34 = vmul.f32 1.442695, %v678_v33 }
 0x2d7   : > { %1627 = vpow2.f32 %v679_v34 }
 0x2d9   : > { %v1626_v35 = vpop.eup %1625 }
 0x2da   : > { %v568_v36 = vsel %vm514_vm2, %v1626_v35, 0.0 }
 0x2db   : > { %569 = vadd.xlane.f32.xlu0 %v568_v36  ;;  %v508_v36 = vld [vmem:[%s1934_s3 + $0x8] sm:$0xf] }
 0x2e1   : > { %v1628_v37 = vpop.eup %1627 }
 0x2e2   : > { %v681_v38 = vsel %vm514_vm2, %v1628_v37, 0.0 }
 0x2e3   : > { %682 = vadd.xlane.f32.xlu1 %v681_v38 }
 0x2f1   : > { %574 = vrot.lane.b32.xlu0 %v1776_v10, %s1658_s23 }
 0x2f4   : > { %687 = vrot.lane.b32.xlu1 %v1776_v10, %s1659_s24 }
 0x2f5   : > { %828 = vrot.lane.b32.xlu0 %v1776_v10, %s1660_s27  ;;  %s435_s27 = scalar_lea.vmem %s1944_s13, %s1426_s14 }
 0x2f8   : > { %830 = vrot.lane.b32.xlu1 %v1776_v10, %s1661_s28 }
 0x368   : > { %v570_v39 = vpop.xlane.xlu0 %569 }
 0x369   : > { %1629 = vrcp.f32 %v570_v39 }
 0x36c   : > { %v575_v40 = vpop.permute.xlu0 %574 }
 0x36d   : > { %v581_v41 = vsel %vm579_vm3, %v575_v40, 0 }
 0x36e   : > { %1511 = vmatpush3.bf16.msra.mxu0 %v581_v41 }
 0x36f   : > { %1522 = vmatprep.subr.bf16.mxu0 %v1653_v1 }
 0x370   : > { %v683_v42 = vpop.xlane.xlu1 %682  ;;  %v829_v5 = vpop.permute.xlu0 %828 }
 0x371   : > { %1631 = vrcp.f32 %v683_v42 }
 0x373   : > { %v1630_v43 = vpop.eup %1629 }
 0x374   : > { %v572_v44 = vmul.f32 %v1630_v43, %v1626_v35  ;;  %v688_v45 = vpop.permute.xlu1 %687 }
 0x375   : > { %v693_v47 = vsel %vm579_vm3, %v688_v45, 0 }
 0x376   : > { %v573_v46 = vpack.c.bf16 %v572_v44, %v572_v44 }
 0x378   : > { %1513 = vmatmul.mubr.msk.bf16.vlgmr.msra.gmra.mrb[0].mxu0 %vm514_vm2, %v573_v46  ;;  %v831_v60 = vpop.permute.xlu1 %830 }
 0x379   : > { %1523 = vmatpush3.bf16.msra.mxu0 %v693_v47  ;;  %1524 = vmatprep.mubr.msk.bf16.mxu0 %vm1654_vm0, %v1653_v1  ;;  %v836_v2 = vsel %vm514_vm2, %v831_v60, 0 }
 0x37a   : > { %1534 = vmatprep.subr.bf16.mxu0 %v1653_v1 }
 0x37b   : > { %v1632_v48 = vpop.eup %1631 }
 0x37c   : > { %v685_v49 = vmul.f32 %v1632_v48, %v1628_v37  ;;  %v944_v37 = vsel %vm579_vm3, %v508_v36, 0 }
 0x37e   : > { %v686_v50 = vpack.c.bf16 %v685_v49, %v685_v49 }
 0x380   : > { %1525 = vmatmul.mubr.msk.bf16.vlgmr.msra.gmra.mrb[4].mxu0 %vm514_vm2, %v686_v50 }
 0x381   : > { %1536 = vmatprep.mubr.msk.bf16.mxu0 %vm1654_vm0, %v1653_v1  ;;  %1535 = vmatpush3.bf16.msra.mxu0 %v786_v52 }
 0x382   : > { %1546 = vmatprep.subr.bf16.mxu0 %v1653_v1 }
 0x44b   : > { %v617_v55 = vpop.f32.mrb[0].mxu0 }
 0x44c   : > { %v623_v56 = vpack.c.bf16 %v617_v55, %v617_v55  ;;  %v1514_v57 = vpop.f32.mrb[1].mxu0 }
 0x44d   : > { %v620_v58 = vpop.f32.mrb[2].mxu0 }
 0x44e   : > { %v1515_v59 = vpop.f32.mrb[3].mxu0  ;;  %1537 = vmatmul.mubr.msk.bf16.vlgmr.msra.gmra.mrb[8].mxu0 %vm514_vm2, %v623_v56  ;;  %v509_v56 = vld [vmem:[%s1934_s3 + $0xc] sm:$0xf] }
 0x44f   : > { %1548 = vmatprep.mubr.msk.bf16.mxu0 %vm1654_vm0, %v1653_v1 }
 0x453   : > { %v729_v61 = vpop.f32.mrb[4].mxu0 }
 0x454   : > { %v735_v62 = vpack.c.bf16 %v729_v61, %v729_v61  ;;  %v1526_v63 = vpop.f32.mrb[5].mxu0 }
 0x455   : > { %v732_v0 = vpop.f32.mrb[6].mxu0 }
 0x456   : > { %v1527_v4 = vpop.f32.mrb[7].mxu0  ;;  %1531 = vmatmul.mubr.msk.bf16.vlgmr.msra.gmra.mrb[12].mxu1 %vm514_vm2, %v735_v62 }
 0x457   : > { %1541 = vmatpush3.bf16.xpose.msra.mxu1 %v836_v2  ;;  %1542 = vmatprep.mubr.msk.bf16.mxu1 %vm1654_vm0, %v1653_v1 }
 0x458   : > { %1552 = vmatprep.subr.bf16.mxu1 %v1653_v1 }
 0x45e   : > { %1543 = vmatmul.mubr.msk.bf16.vlgmr.msra.gmra.mrb[16].mxu1 %vm514_vm2, %v829_v5 }
 0x45f   : > { %1554 = vmatprep.mubr.msk.bf16.mxu1 %vm1654_vm0, %v1653_v1  ;;  %1553 = vmatpush3.bf16.msra.mxu1 %v944_v37  ;;  %v1623_v37 = vld [vmem:[%s1940_s9 + $0x10] sm:$0xff]  }
 0x460   : > { %1564 = vmatprep.subr.bf16.mxu1 %v1653_v1 }
 0x521   : > { %v822_v6 = vpop.f32.mrb[8].mxu0 }
 0x522   : > { %v1538_v7 = vpop.f32.mrb[9].mxu0 }
 0x523   : > { %v825_v8 = vpop.f32.mrb[10].mxu0 }
 0x524   : > { %v1539_v9 = vpop.f32.mrb[11].mxu0 }
 0x529   : > { %v776_v11 = vpop.f32.mrb[12].mxu1 }
 0x52a   : > { %v1831_v12 = vadd.f32 %v822_v6, %v776_v11  ;;  %v1532_v13 = vpop.f32.mrb[13].mxu1  ;;  %v1444_v11 = vld [vmem:[%s1935_s4] ss:$0 sm:$0xff] }
 0x52b   : > { %v779_v14 = vpop.f32.mrb[14].mxu1 }
 0x52c   : > { %v1533_v15 = vpop.f32.mrb[15].mxu1 }
 0x531   : > { %v872_v16 = vpop.f32.mrb[16].mxu1 }
 0x532   : > { %v878_v17 = vmul.f32 0.35355338, %v872_v16  ;;  %v1544_v18 = vpop.f32.mrb[17].mxu1 }
 0x533   : > { %v875_v19 = vpop.f32.mrb[18].mxu1 }
 0x534   : > { %v1545_v20 = vpop.f32.mrb[19].mxu1  ;;  %v879_v21 = vsel %vm514_vm2, %v878_v17, -inf }
 0x535   : > { %880 = vmax.xlane.f32.xlu1 %v879_v21 }
 0x546   : > { %989 = vrot.lane.b32.xlu1 %v1776_v10, %s1662_s17 }
 0x54a   : > { %987 = vrot.lane.b32.xlu1 %v1776_v10, %s1663_s18 }
 0x5c2   : > { %v881_v22 = vpop.xlane.xlu1 %880 }
 0x5c3   : > { %v882_v23 = vsub.f32 %v878_v17, %v881_v22 }
 0x5c5   : > { %v883_v24 = vmul.f32 1.442695, %v882_v23 }
 0x5c6   : > { %v990_v32 = vpop.permute.xlu1 %989 }
 0x5c7   : > { %1633 = vpow2.f32 %v883_v24  ;;  %v995_v34 = vsel %vm514_vm2, %v990_v32, 0  ;;  %v1619_v24 = vld [vmem:[%s1938_s7] sm:$0xff]  }
 0x5ca   : > { %v988_v35 = vpop.permute.xlu1 %987 }
 0x5d1   : > { %v1634_v25 = vpop.eup %1633 }
 0x5d2   : > { %v885_v26 = vsel %vm514_vm2, %v1634_v25, 0.0 }
 0x5d3   : > { %886 = vadd.xlane.f32.xlu0 %v885_v26  ;;  %v1622_v26 = vld [vmem:[%s1940_s9 + $0x8] sm:$0xff]  }
 0x5e9   : > { %891 = vrot.lane.b32.xlu0 %v1776_v10, %s1664_s19 }
 0x660   : > { %v887_v27 = vpop.xlane.xlu0 %886 }
 0x661   : > { %1635 = vrcp.f32 %v887_v27 }
 0x664   : > { %v892_v28 = vpop.permute.xlu0 %891 }
 0x665   : > { %v897_v29 = vsel %vm579_vm3, %v892_v28, 0 }
 0x666   : > { %1547 = vmatpush3.bf16.msra.mxu0 %v897_v29 }
 0x667   : > { %1558 = vmatprep.subr.bf16.mxu0 %v1653_v1 }
 0x66b   : > { %v1636_v30 = vpop.eup %1635 }
 0x66c   : > { %v889_v31 = vmul.f32 %v1636_v30, %v1634_v25  ;;  %v1620_v25 = vld [vmem:[%s1938_s7 + $0x8] sm:$0xff]  }
 0x66e   : > { %v890_v33 = vpack.c.bf16 %v889_v31, %v889_v31  ;;  %v1445_v31 = vld [vmem:[%s1936_s5] ss:$0 sm:$0xff] }
 0x670   : > { %1549 = vmatmul.mubr.msk.bf16.vlgmr.msra.gmra.mrb[12].mxu0 %vm514_vm2, %v890_v33  ;;  %v1446_v33 = vld [vmem:[%s1937_s6] ss:$0 sm:$0xff] }
 0x671   : > { %1559 = vmatpush3.bf16.xpose.msra.mxu0 %v995_v34  ;;  %1560 = vmatprep.mubr.msk.bf16.mxu0 %vm1654_vm0, %v1653_v1 }
 0x672   : > { %1570 = vmatprep.subr.bf16.mxu0 %v1653_v1 }
 0x678   : > { %1561 = vmatmul.mubr.msk.bf16.vlgmr.msra.gmra.mrb[16].mxu0 %vm514_vm2, %v988_v35 }
 0x679   : > { %1572 = vmatprep.mubr.msk.bf16.mxu0 %vm1654_vm0, %v1653_v1 }
 0x743   : > { %v933_v38 = vpop.f32.mrb[12].mxu0 }
 0x744   : > { %v939_v39 = vpack.c.bf16 %v933_v38, %v933_v38  ;;  %v1550_v40 = vpop.f32.mrb[13].mxu0  ;;  %v1624_v38 = vld [vmem:[%s1940_s9 + $0x18] sm:$0xff]  }
 0x745   : > { %v936_v41 = vpop.f32.mrb[14].mxu0 }
 0x746   : > { %v1551_v42 = vpop.f32.mrb[15].mxu0  ;;  %1555 = vmatmul.mubr.msk.bf16.vlgmr.msra.gmra.mrb[20].mxu1 %vm514_vm2, %v939_v39  ;;  %v1447_v39 = vld [vmem:[%s1939_s8] ss:$0 sm:$0xff] }
 0x747   : > { %1566 = vmatprep.mubr.msk.bf16.mxu1 %vm1654_vm0, %v1653_v1 }
 0x74b   : > { %v1031_v43 = vpop.f32.mrb[16].mxu0 }
 0x74c   : > { %v1037_v44 = vmul.f32 0.35355338, %v1031_v43  ;;  %v1562_v45 = vpop.f32.mrb[17].mxu0 }
 0x74d   : > { %v1034_v46 = vpop.f32.mrb[18].mxu0 }
 0x74e   : > { %v1563_v47 = vpop.f32.mrb[19].mxu0  ;;  %v1038_v48 = vsel %vm514_vm2, %v1037_v44, -inf }
 0x74f   : > { %1039 = vmax.xlane.f32.xlu0 %v1038_v48 }
 0x765   : > { %1050 = vrot.lane.b32.xlu0 %v1776_v10, %s1665_s22  ;;  %v1103_v10 = vsel %vm579_vm3, %v509_v56, 0 }
 0x766   : > { %1571 = vmatpush3.bf16.msra.mxu0 %v1103_v10 }
 0x767   : > { %1584 = vmatprep.subr.bf16.mxu0 %v1653_v1 }
 0x7dc   : > { %v1040_v49 = vpop.xlane.xlu0 %1039 }
 0x7dd   : > { %v1041_v50 = vsub.f32 %v1037_v44, %v1040_v49 }
 0x7df   : > { %v1042_v51 = vmul.f32 1.442695, %v1041_v50 }
 0x7e0   : > { %v1051_v52 = vpop.permute.xlu0 %1050 }
 0x7e1   : > { %1637 = vpow2.f32 %v1042_v51  ;;  %v1056_v53 = vsel %vm579_vm3, %v1051_v52, 0 }
 0x7e2   : > { %1565 = vmatpush3.bf16.msra.mxu1 %v1056_v53 }
 0x7e3   : > { %1576 = vmatprep.subr.bf16.mxu1 %v1653_v1 }
 0x7eb   : > { %v1638_v54 = vpop.eup %1637 }
 0x7ec   : > { %v1044_v55 = vsel %vm514_vm2, %v1638_v54, 0.0 }
 0x7ed   : > { %1045 = vadd.xlane.f32.xlu1 %v1044_v55 }
 0x819   : > { %v980_v57 = vpop.f32.mrb[20].mxu1 }
 0x81a   : > { %v986_v58 = vadd.f32 %v980_v57, %v1831_v12  ;;  %v1556_v59 = vpop.f32.mrb[21].mxu1 }
 0x81b   : > { %v983_v60 = vpop.f32.mrb[22].mxu1 }
 0x81c   : > { %v1557_v61 = vpop.f32.mrb[23].mxu1 }
 0x87a   : > { %v1046_v62 = vpop.xlane.xlu1 %1045 }
 0x87b   : > { %1639 = vrcp.f32 %v1046_v62  ;;  %v1457_v62 = vld [vmem:[%s1942_s11] ss:$0 sm:$0xff] }
 0x885   : > { %v1640_v63 = vpop.eup %1639 }
 0x886   : > { %v1048_v0 = vmul.f32 %v1640_v63, %v1638_v54 }
 0x888   : > { %v1049_v2 = vpack.c.bf16 %v1048_v0, %v1048_v0  ;;  %v1458_v0 = vld [vmem:[%s1943_s12] ss:$0 sm:$0xff] }
 0x88a   : > { %1567 = vmatmul.mubr.msk.bf16.vlgmr.msra.gmra.mrb[24].mxu1 %vm514_vm2, %v1049_v2 }
 0x88b   : > { %1580 = vmatprep.mubr.msk.bf16.mxu1 %vm1654_vm0, %v1653_v1  ;;  %1577 = vmatpush3.bf16.msra.mxu1 %v1619_v24 }
 0x88c   : > { %1578 = vmatprep.subr.bf16.mxu1 %v1653_v1 }
 0x88f   : > { %1579 = vmatpush3.bf16.msra.mxu1 %v1620_v25 }
 0x95d   : > { %v1092_v4 = vpop.f32.mrb[24].mxu1 }
 0x95e   : > { %v1098_v5 = vpack.c.bf16 %v1092_v4, %v1092_v4  ;;  %v1568_v6 = vpop.f32.mrb[25].mxu1 }
 0x95f   : > { %v1095_v7 = vpop.f32.mrb[26].mxu1 }
 0x960   : > { %v1569_v8 = vpop.f32.mrb[27].mxu1  ;;  %1573 = vmatmul.mubr.msk.bf16.vlgmr.msra.gmra.mrb[20].mxu0 %vm514_vm2, %v1098_v5 }
 0x961   : > { %1592 = vmatprep.mubr.msk.bf16.mxu0 %vm1654_vm0, %v1653_v1 }
 0xa33   : > { %v1139_v9 = vpop.f32.mrb[20].mxu0 }
 0xa34   : > { %v1145_v12 = vadd.f32 %v1139_v9, %v986_v58  ;;  %v1574_v13 = vpop.f32.mrb[21].mxu0 }
 0xa35   : > { %v1142_v14 = vpop.f32.mrb[22].mxu0 }
 0xa36   : > { %v1153_v15 = vadd.f32 %v1444_v11, %v1145_v12  ;;  %v1575_v16 = vpop.f32.mrb[23].mxu0 }
 0xa38   : > { %v1154_v17 = vadd.f32 %v1153_v15, %v1766_v3  ;;  %v1621_v3 = vld [vmem:[%s1940_s9] sm:$0xff]  }
 0xa39   : > { %1585 = vmatpush3.bf16.msra.mxu0 %v1621_v3 }
 0xa3a   : > { %v1157_v18 = vsel %vm462_vm1, %v1154_v17, 0.0  ;;  %1586 = vmatprep.subr.bf16.mxu0 %v1653_v1 }
 0xa3b   : > { %1158 = vadd.xlane.f32.xlu1 %v1157_v18 }
 0xa3d   : > { %1587 = vmatpush3.bf16.msra.mxu0 %v1622_v26 }
 0xa3e   : > { %1588 = vmatprep.subr.bf16.mxu0 %v1653_v1 }
 0xa41   : > { %1589 = vmatpush3.bf16.msra.mxu0 %v1623_v37 }
 0xa42   : > { %1590 = vmatprep.subr.bf16.mxu0 %v1653_v1  ;;  %v1451_v1 = vld [vmem:[%s1941_s10] ss:$0 sm:$0xff] }
 0xa45   : > { %1591 = vmatpush3.bf16.msra.mxu0 %v1624_v38 }
 0xac8   : > { %v1159_v19 = vpop.xlane.xlu1 %1158 }
 0xac9   : > { %v1161_v20 = vmul.f32 0.03125, %v1159_v19 }
 0xacb   : > { %v1162_v21 = vsub.f32 %v1154_v17, %v1161_v20 }
 0xacd   : > { %v1163_v22 = vmul.f32 %v1162_v21, %v1162_v21 }
 0xacf   : > { %v1164_v23 = vsel %vm462_vm1, %v1163_v22, 0.0 }
 0xad0   : > { %1165 = vadd.xlane.f32.xlu1 %v1164_v23 }
 0xb5d   : > { %v1166_v27 = vpop.xlane.xlu1 %1165 }
 0xb5e   : > { %v1167_v28 = vmul.f32 0.03125, %v1166_v27 }
 0xb60   : > { %v1168_v29 = vadd.f32 1e-05, %v1167_v28 }
 0xb62   : > { %1641 = vrsqrt.f32 %v1168_v29 }
 0xb6c   : > { %v1642_v30 = vpop.eup %1641 }
 0xb6d   : > { %v1170_v32 = vmul.f32 %v1642_v30, %v1162_v21 }
 0xb6f   : > { %v1177_v34 = vmul.f32 %v1445_v31, %v1170_v32 }
 0xb71   : > { %v1184_v35 = vadd.f32 %v1446_v33, %v1177_v34 }
 0xb73   : > { %v1185_v36 = vpack.c.bf16 %v1184_v35, %v1184_v35 }
 0xb75   : > { %1581 = vmatmul.mubr.msk.bf16.vlgmr.msra.gmra.mrb[28].mxu1 %vm462_vm1, %v1185_v36 }
 0xc48   : > { %v1246_v40 = vpop.f32.mrb[28].mxu1 }
 0xc49   : > { %v1247_v41 = vadd.f32 %v1447_v39, %v1246_v40  ;;  %v1582_v42 = vpop.f32.mrb[29].mxu1 }
 0xc4a   : > { %v1249_v43 = vpop.f32.mrb[30].mxu1 }
 0xc4b   : > { %v1252_v44 = vmax.f32 %v1247_v41, 0.0  ;;  %v1583_v45 = vpop.f32.mrb[31].mxu1 }
 0xc4d   : > { %v1253_v46 = vpack.c.bf16 %v1252_v44, %v1252_v44 }
 0xc4f   : > { %1593 = vmatmul.mubr.msk.bf16.vlgmr.msra.gmra.mrb[24].mxu0 %vm1293_vm4, %v1253_v46 }
 0xd22   : > { %v1331_v47 = vpop.f32.mrb[24].mxu0 }
 0xd23   : > { %v1332_v48 = vadd.f32 %v1451_v1, %v1331_v47  ;;  %v1594_v49 = vpop.f32.mrb[25].mxu0 }
 0xd24   : > { %v1334_v50 = vpop.f32.mrb[26].mxu0 }
 0xd25   : > { %v1595_v51 = vpop.f32.mrb[27].mxu0  ;;  %v1337_v52 = vadd.f32 %v1332_v48, %v1184_v35 }
 0xd27   : > { %v1340_v53 = vsel %vm462_vm1, %v1337_v52, 0.0 }
 0xd28   : > { %1341 = vadd.xlane.f32.xlu1 %v1340_v53 }
 0xdb5   : > { %v1342_v54 = vpop.xlane.xlu1 %1341 }
 0xdb6   : > { %v1343_v55 = vmul.f32 0.03125, %v1342_v54 }
 0xdb8   : > { %v1344_v56 = vsub.f32 %v1337_v52, %v1343_v55 }
 0xdba   : > { %v1345_v10 = vmul.f32 %v1344_v56, %v1344_v56 }
 0xdbc   : > { %v1346_v57 = vsel %vm462_vm1, %v1345_v10, 0.0 }
 0xdbd   : > { %1347 = vadd.xlane.f32.xlu1 %v1346_v57 }
 0xe4a   : > { %v1348_v58 = vpop.xlane.xlu1 %1347 }
 0xe4b   : > { %v1349_v59 = vmul.f32 0.03125, %v1348_v58 }
 0xe4d   : > { %v1350_v60 = vadd.f32 1e-05, %v1349_v59 }
 0xe4f   : > { %1643 = vrsqrt.f32 %v1350_v60 }
 0xe59   : > { %v1644_v61 = vpop.eup %1643 }
 0xe5a   : > { %v1352_v63 = vmul.f32 %v1644_v61, %v1344_v56 }
 0xe5c   : > { %v1359_v2 = vmul.f32 %v1457_v62, %v1352_v63 }
 0xe5e   : > { %v1366_v4 = vadd.f32 %v1458_v0, %v1359_v2 }
 0xe60   : > { %1367 = vst.msk [vmem:[%s435_s27] sm:$0xff] %vm462_vm1, %v1366_v4 }
 0xe61 PF: > { %s23_s25 = sadd.s32 1, %s1651_s25  }
 0xe62   : > { %p20_p4 = scmp.ge.s32.totalorder %s23_s25, 4  }
 0xe64   :  { %22 = sbr.rel (!%p20_p4) target bundleno = 1 (0x1), region = 102 }

</bundles_post_ra>
